<compile_context>
chip_gen: v6e
topology: v6e:2x2x1
jax: 0.10.0
libtpu: 0.0.40
codegen_flags: <defaults>
</compile_context>

<pallas_src>
import math

import numpy as np
import jax
import jax.numpy as jnp
from jax import lax
from jax.experimental import pallas as pl
from jax.experimental.pallas import tpu as pltpu

_VMEM_LIMIT = 48 * 1024 * 1024     # stay well under v7x's 64 MiB physical VMEM
_LN_EPS = 1e-5


# -----------------------------------------------------------------------------
# small helpers
# -----------------------------------------------------------------------------
def _row_tile(n, preferred=(512, 256, 128, 64, 32, 16, 8)):
    """Largest preferred row tile dividing n, else n itself (full extent)."""
    for t in preferred:
        if t <= n and n % t == 0:
            return t
    return n


def _seq_tile(n, preferred=(256, 128)):
    for t in preferred:
        if n % t == 0:
            return t
    return n


def _erf(x):
    # Abramowitz-Stegun 7.1.26 (|err| < 1.5e-7): only mul/add/exp/abs/sign,
    # so it always lowers inside a Pallas TPU kernel.
    a1, a2, a3, a4, a5 = (0.254829592, -0.284496736, 1.421413741,
                          -1.453152027, 1.061405429)
    p = 0.3275911
    sgn = jnp.sign(x)
    ax = jnp.abs(x)
    t = 1.0 / (1.0 + p * ax)
    poly = ((((a5 * t + a4) * t + a3) * t + a2) * t + a1) * t
    return sgn * (1.0 - poly * jnp.exp(-ax * ax))


def _gelu(x):
    # exact (erf) GELU, matching torch.nn.GELU() default
    return 0.5 * x * (1.0 + _erf(x * (1.0 / math.sqrt(2.0))))


def _layernorm(x, g, b):
    mean = jnp.mean(x, axis=-1, keepdims=True)
    xc = x - mean
    var = jnp.mean(xc * xc, axis=-1, keepdims=True)
    return xc * lax.rsqrt(var + _LN_EPS) * g + b


def _mosaic_params(*sem):
    return pltpu.CompilerParams(dimension_semantics=sem,
                                vmem_limit_bytes=_VMEM_LIMIT)


def _interp_matrix(in_size, out_size):
    """Row-mixing matrix for PyTorch bilinear interpolate, align_corners=False."""
    m = np.zeros((out_size, in_size), np.float32)
    scale = in_size / out_size
    for i in range(out_size):
        src = max((i + 0.5) * scale - 0.5, 0.0)
        i0 = min(int(np.floor(src)), in_size - 1)
        i1 = min(i0 + 1, in_size - 1)
        w1 = src - i0
        m[i, i0] += 1.0 - w1
        m[i, i1] += w1
    return jnp.asarray(m)


def _pool_matrix(in_size, out_size):
    """Row-mixing matrix for PyTorch AdaptiveAvgPool (per axis)."""
    m = np.zeros((out_size, in_size), np.float32)
    for i in range(out_size):
        start = (i * in_size) // out_size
        end = int(np.ceil((i + 1) * in_size / out_size))
        m[i, start:end] = 1.0 / (end - start)
    return jnp.asarray(m)


# -----------------------------------------------------------------------------
# Kernel 1: fused LayerNorm + packed QKV projection
# -----------------------------------------------------------------------------
def _ln_qkv_kernel(x_ref, g_ref, b_ref, w_ref, bias_ref, qkv_ref):
    xn = _layernorm(x_ref[...], g_ref[...], b_ref[...])          # (tm, D) f32
    acc = jnp.dot(xn.astype(jnp.bfloat16), w_ref[...],
                  preferred_element_type=jnp.float32)             # (tm, 3D)
    qkv_ref[...] = (acc + bias_ref[...]).astype(qkv_ref.dtype)


def ln_qkv_proj(x2, gamma, beta, w_qkv_t, b_qkv):
    R, D = x2.shape
    D3 = w_qkv_t.shape[1]
    tm = _row_tile(R)
    return pl.pallas_call(
        _ln_qkv_kernel,
        out_shape=jax.ShapeDtypeStruct((R, D3), jnp.bfloat16),
        grid_spec=pltpu.PrefetchScalarGridSpec(
            num_scalar_prefetch=0,
            grid=(R // tm,),
            in_specs=[
                pl.BlockSpec((tm, D), lambda i: (i, 0)),
                pl.BlockSpec((1, D), lambda i: (0, 0)),
                pl.BlockSpec((1, D), lambda i: (0, 0)),
                pl.BlockSpec((D, D3), lambda i: (0, 0)),
                pl.BlockSpec((1, D3), lambda i: (0, 0)),
            ],
            out_specs=pl.BlockSpec((tm, D3), lambda i: (i, 0)),
        ),
        compiler_params=_mosaic_params("parallel"),
    )(x2, gamma.reshape(1, D), beta.reshape(1, D), w_qkv_t,
      b_qkv.reshape(1, D3))


# -----------------------------------------------------------------------------
# Kernel 2: flash attention (online softmax) with fused residual add
# -----------------------------------------------------------------------------
def _flash_attn_kernel(q_ref, k_ref, v_ref, res_ref, o_ref, m_sc, l_sc, acc_sc):
    ki = pl.program_id(2)

    @pl.when(ki == 0)
    def _init():
        m_sc[...] = jnp.full(m_sc.shape, -jnp.inf, jnp.float32)
        l_sc[...] = jnp.zeros(l_sc.shape, jnp.float32)
        acc_sc[...] = jnp.zeros(acc_sc.shape, jnp.float32)

    q = q_ref[0]                                   # (tq, D) bf16
    k = k_ref[0]                                   # (tk, D) bf16
    v = v_ref[0]                                   # (tk, D) bf16

    scale = 1.0 / math.sqrt(q.shape[-1])
    # q @ k^T contracting on D (no materialized transpose)
    s = lax.dot_general(q, k, (((1,), (1,)), ((), ())),
                        preferred_element_type=jnp.float32) * scale   # (tq,tk)

    m_prev = m_sc[...]
    m_new = jnp.maximum(m_prev, jnp.max(s, axis=-1, keepdims=True))
    alpha = jnp.exp(m_prev - m_new)
    p = jnp.exp(s - m_new)

    l_sc[...] = alpha * l_sc[...] + jnp.sum(p, axis=-1, keepdims=True)
    acc_sc[...] = alpha * acc_sc[...] + jnp.dot(
        p.astype(v.dtype), v, preferred_element_type=jnp.float32)
    m_sc[...] = m_new

    @pl.when(ki == pl.num_programs(2) - 1)
    def _finalize():
        inv_l = pl.reciprocal(l_sc[...], approx=True)          # EUP vrcp slot
        o_ref[0] = (res_ref[0].astype(jnp.float32)
                    + acc_sc[...] * inv_l).astype(o_ref.dtype)


def flash_attention_residual(q, k, v, x_res):
    """out = x_res + softmax(q k^T / sqrt(D)) v."""
    B, N, D = q.shape
    tq = _seq_tile(N)
    tk = _seq_tile(N)
    q_spec = pl.BlockSpec((1, tq, D), lambda b, qi, ki: (b, qi, 0))
    kv_spec = pl.BlockSpec((1, tk, D), lambda b, qi, ki: (b, ki, 0))
    o_spec = pl.BlockSpec((1, tq, D), lambda b, qi, ki: (b, qi, 0))
    return pl.pallas_call(
        _flash_attn_kernel,
        out_shape=jax.ShapeDtypeStruct((B, N, D), x_res.dtype),
        grid_spec=pltpu.PrefetchScalarGridSpec(
            num_scalar_prefetch=0,
            grid=(B, N // tq, N // tk),
            in_specs=[q_spec, kv_spec, kv_spec, q_spec],
            out_specs=o_spec,
            scratch_shapes=[
                pltpu.VMEM((tq, 1), jnp.float32),   # running max  m
                pltpu.VMEM((tq, 1), jnp.float32),   # running sum  l
                pltpu.VMEM((tq, D), jnp.float32),   # output accumulator
            ],
        ),
        compiler_params=_mosaic_params("parallel", "parallel", "arbitrary"),
    )(q, k, v, x_res)


# -----------------------------------------------------------------------------
# Kernel 3: fused LayerNorm + MLP (Linear -> GELU -> Linear) + residual
# -----------------------------------------------------------------------------
def _ln_mlp_kernel(x_ref, g_ref, b_ref, w1_ref, b1_ref, w2_ref, b2_ref, o_ref):
    x = x_ref[...]                                                  # (tm, D)
    xn = _layernorm(x, g_ref[...], b_ref[...]).astype(jnp.bfloat16)
    h = jnp.dot(xn, w1_ref[...], preferred_element_type=jnp.float32) + b1_ref[...]
    h = _gelu(h)
    out = jnp.dot(h.astype(jnp.bfloat16), w2_ref[...],
                  preferred_element_type=jnp.float32) + b2_ref[...]
    o_ref[...] = (x + out).astype(o_ref.dtype)


def ln_mlp_residual(x2, gamma, beta, w1_t, b1, w2_t, b2):
    R, D = x2.shape
    M = w1_t.shape[1]
    tm = _row_tile(R)
    return pl.pallas_call(
        _ln_mlp_kernel,
        out_shape=jax.ShapeDtypeStruct((R, D), x2.dtype),
        grid_spec=pltpu.PrefetchScalarGridSpec(
            num_scalar_prefetch=0,
            grid=(R // tm,),
            in_specs=[
                pl.BlockSpec((tm, D), lambda i: (i, 0)),
                pl.BlockSpec((1, D), lambda i: (0, 0)),
                pl.BlockSpec((1, D), lambda i: (0, 0)),
                pl.BlockSpec((D, M), lambda i: (0, 0)),
                pl.BlockSpec((1, M), lambda i: (0, 0)),
                pl.BlockSpec((M, D), lambda i: (0, 0)),
                pl.BlockSpec((1, D), lambda i: (0, 0)),
            ],
            out_specs=pl.BlockSpec((tm, D), lambda i: (i, 0)),
        ),
        compiler_params=_mosaic_params("parallel"),
    )(x2, gamma.reshape(1, D), beta.reshape(1, D), w1_t,
      b1.reshape(1, M), w2_t, b2.reshape(1, D))


# -----------------------------------------------------------------------------
# Kernels 4 & 5: 1x1 conv as row-tiled matmul (+ optional 0.5/0.5 blend)
# -----------------------------------------------------------------------------
def _linear_kernel(x_ref, w_ref, b_ref, o_ref):
    acc = jnp.dot(x_ref[...].astype(jnp.bfloat16), w_ref[...],
                  preferred_element_type=jnp.float32)
    o_ref[...] = (acc + b_ref[...]).astype(o_ref.dtype)


def _linear_blend_kernel(x_ref, w_ref, b_ref, y_ref, o_ref):
    acc = jnp.dot(x_ref[...].astype(jnp.bfloat16), w_ref[...],
                  preferred_element_type=jnp.float32)
    o_ref[...] = ((acc + b_ref[...]) * 0.5
                  + y_ref[...].astype(jnp.float32) * 0.5).astype(o_ref.dtype)


def linear_rows(x2, w_t, b):
    R, Din = x2.shape
    Dout = w_t.shape[1]
    tm = _row_tile(R)
    return pl.pallas_call(
        _linear_kernel,
        out_shape=jax.ShapeDtypeStruct((R, Dout), jnp.float32),
        grid_spec=pltpu.PrefetchScalarGridSpec(
            num_scalar_prefetch=0,
            grid=(R // tm,),
            in_specs=[
                pl.BlockSpec((tm, Din), lambda i: (i, 0)),
                pl.BlockSpec((Din, Dout), lambda i: (0, 0)),
                pl.BlockSpec((1, Dout), lambda i: (0, 0)),
            ],
            out_specs=pl.BlockSpec((tm, Dout), lambda i: (i, 0)),
        ),
        compiler_params=_mosaic_params("parallel"),
    )(x2, w_t, b.reshape(1, Dout))


def linear_blend_rows(x2, w_t, b, y2):
    R, Din = x2.shape
    Dout = w_t.shape[1]
    tm = _row_tile(R)
    return pl.pallas_call(
        _linear_blend_kernel,
        out_shape=jax.ShapeDtypeStruct((R, Dout), y2.dtype),
        grid_spec=pltpu.PrefetchScalarGridSpec(
            num_scalar_prefetch=0,
            grid=(R // tm,),
            in_specs=[
                pl.BlockSpec((tm, Din), lambda i: (i, 0)),
                pl.BlockSpec((Din, Dout), lambda i: (0, 0)),
                pl.BlockSpec((1, Dout), lambda i: (0, 0)),
                pl.BlockSpec((tm, Dout), lambda i: (i, 0)),
            ],
            out_specs=pl.BlockSpec((tm, Dout), lambda i: (i, 0)),
        ),
        compiler_params=_mosaic_params("parallel"),
    )(x2, w_t, b.reshape(1, Dout), y2)


# -----------------------------------------------------------------------------
# Module-level forwards (channels-last internally, NCHW at the boundaries)
# -----------------------------------------------------------------------------
def swin_block_forward(x_bhwc, p):
    """SwinTransformerBlock.forward on a channels-last (B, H, W, C) tensor."""
    B, H, W, D = x_bhwc.shape
    assert H == W, "SwinTransformerBlock assumes square spatial input"
    N = H * W
    t = x_bhwc.reshape(B, N, D)

    # t = t + attn(norm1(t))
    qkv = ln_qkv_proj(t.reshape(B * N, D), p["ln1_g"], p["ln1_b"],
                      p["w_qkv_t"], p["b_qkv"]).reshape(B, N, 3 * D)
    q, k, v = jnp.split(qkv, 3, axis=-1)           # bf16, cheap XLA slices
    t = flash_attention_residual(q, k, v, t)

    # t = t + mlp(norm2(t))
    t = ln_mlp_residual(t.reshape(B * N, D), p["ln2_g"], p["ln2_b"],
                        p["w1_t"], p["b1"], p["w2_t"], p["b2"]).reshape(B, N, D)

    # 1x1 conv over channels, then adaptive average pool
    Dout = p["conv_w_t"].shape[1]
    y = linear_rows(t.reshape(B * N, D), p["conv_w_t"], p["conv_b"])
    s = int(round(math.sqrt(N)))
    y = y.reshape(B, s, s, Dout)
    Pm = _pool_matrix(s, p["out_size"])
    # TODO(synk): adaptive avg-pool applied as separable mixing matrices via
    # XLA einsum (data-movement bound), not a Pallas kernel.
    return jnp.einsum("oh,pw,bhwc->bopc", Pm, Pm, y)


def reformer_forward(x0_bhwc, y_bhwc, conv_w_t, conv_b):
    B, H, W, Cin = x0_bhwc.shape
    _, h, w, Cout = y_bhwc.shape
    Mh = _interp_matrix(H, h)
    Mw = _interp_matrix(W, w)
    # TODO(synk): bilinear resize (align_corners=False) applied as separable
    # interpolation matrices via XLA einsum, not a Pallas kernel.
    xi = jnp.einsum("oh,pw,bhwc->bopc", Mh, Mw, x0_bhwc)
    out = linear_blend_rows(xi.reshape(B * h * w, Cin), conv_w_t, conv_b,
                            y_bhwc.reshape(B * h * w, Cout))
    return out.reshape(B, h, w, Cout)


def swin_converter_forward(x_bchw, block_params, reform_w_t, reform_b):
    """SwinConverter.forward: y = attn(x); return reform_conv(x, y)."""
    x_bhwc = jnp.transpose(x_bchw, (0, 2, 3, 1))
    y = x_bhwc
    for p in block_params:
        y = swin_block_forward(y, p)
    out = reformer_forward(x_bhwc, y, reform_w_t, reform_b)
    return jnp.transpose(out, (0, 3, 1, 2))        # back to NCHW


# -----------------------------------------------------------------------------
# Pure-JAX f32 reference (PyTorch semantics)
# -----------------------------------------------------------------------------
def _ref_layernorm(x, g, b):
    mean = jnp.mean(x, -1, keepdims=True)
    var = jnp.mean((x - mean) ** 2, -1, keepdims=True)
    return (x - mean) / jnp.sqrt(var + _LN_EPS) * g + b


def _ref_attention(x, p):
    q = x @ p["wq"].T + p["bq"]
    k = x @ p["wk"].T + p["bk"]
    v = x @ p["wv"].T + p["bv"]
    s = jnp.einsum("bnd,bmd->bnm", q, k) / jnp.sqrt(jnp.float32(x.shape[-1]))
    return jnp.einsum("bnm,bmd->bnd", jax.nn.softmax(s, axis=-1), v)


def _ref_gelu(x):
    return 0.5 * x * (1.0 + lax.erf(x * (1.0 / math.sqrt(2.0))))


def _ref_swin_block(x_bhwc, p):
    B, H, W, D = x_bhwc.shape
    N = H * W
    t = x_bhwc.reshape(B, N, D)
    t = t + _ref_attention(_ref_layernorm(t, p["ln1_g"], p["ln1_b"]), p)
    hdn = _ref_layernorm(t, p["ln2_g"], p["ln2_b"])
    hdn = _ref_gelu(hdn @ p["w1"].T + p["b1"]) @ p["w2"].T + p["b2"]
    t = t + hdn
    s = int(round(math.sqrt(N)))
    y = (t @ p["conv_w"].T + p["conv_b"]).reshape(B, s, s, -1)
    Pm = _pool_matrix(s, p["out_size"])
    return jnp.einsum("oh,pw,bhwc->bopc", Pm, Pm, y)


def _ref_swin_converter(x_bchw, block_params, reform_w, reform_b):
    x_bhwc = jnp.transpose(x_bchw, (0, 2, 3, 1))
    y = x_bhwc
    for p in block_params:
        y = _ref_swin_block(y, p)
    B, H, W, _ = x_bhwc.shape
    _, h, w, _ = y.shape
    Mh = _interp_matrix(H, h)
    Mw = _interp_matrix(W, w)
    xi = jnp.einsum("oh,pw,bhwc->bopc", Mh, Mw, x_bhwc)
    out = (xi @ reform_w.T + reform_b) * 0.5 + y * 0.5
    return jnp.transpose(out, (0, 3, 1, 2))


# -----------------------------------------------------------------------------
# Parameter construction
# -----------------------------------------------------------------------------
def _uniform(key, shape, bound):
    return jax.random.uniform(key, shape, jnp.float32, minval=-bound,
                              maxval=bound)


def _make_block_params(key, dim, mlp_dim, out_dim, out_size):
    ks = jax.random.split(key, 16)
    bd = 1.0 / math.sqrt(dim)
    bm = 1.0 / math.sqrt(mlp_dim)
    p = dict(
        ln1_g=1.0 + 0.1 * _uniform(ks[0], (dim,), 1.0),
        ln1_b=0.1 * _uniform(ks[1], (dim,), 1.0),
        wq=_uniform(ks[2], (dim, dim), bd), bq=_uniform(ks[3], (dim,), bd),
        wk=_uniform(ks[4], (dim, dim), bd), bk=_uniform(ks[5], (dim,), bd),
        wv=_uniform(ks[6], (dim, dim), bd), bv=_uniform(ks[7], (dim,), bd),
        ln2_g=1.0 + 0.1 * _uniform(ks[8], (dim,), 1.0),
        ln2_b=0.1 * _uniform(ks[9], (dim,), 1.0),
        w1=_uniform(ks[10], (mlp_dim, dim), bd),
        b1=_uniform(ks[11], (mlp_dim,), bd),
        w2=_uniform(ks[12], (dim, mlp_dim), bm),
        b2=_uniform(ks[13], (dim,), bm),
        conv_w=_uniform(ks[14], (out_dim, dim), bd),
        conv_b=_uniform(ks[15], (out_dim,), bd),
        out_size=out_size,
    )
    # wrapper-side layout plumbing: pack + transpose + cast weights ONCE.
    p["w_qkv_t"] = jnp.concatenate([p["wq"], p["wk"], p["wv"]],
                                   axis=0).T.astype(jnp.bfloat16)
    p["b_qkv"] = jnp.concatenate([p["bq"], p["bk"], p["bv"]])
    p["w1_t"] = p["w1"].T.astype(jnp.bfloat16)
    p["w2_t"] = p["w2"].T.astype(jnp.bfloat16)
    p["conv_w_t"] = p["conv_w"].T.astype(jnp.bfloat16)
    return p


if __name__ == "__main__":
    key = jax.random.PRNGKey(0)
    kx, kb1, kb2, kr = jax.random.split(key, 4)

    # Small config mirroring the stage-3 double_layer structure
    # (two SwinTransformerBlocks feeding a Reformer), scaled down.
    B, C_in, H, W = 2, 32, 16, 16
    blk1 = _make_block_params(kb1, dim=32, mlp_dim=64, out_dim=64, out_size=8)
    blk2 = _make_block_params(kb2, dim=64, mlp_dim=128, out_dim=64, out_size=4)

    kr_w, kr_b = jax.random.split(kr)
    rbound = 1.0 / math.sqrt(C_in)
    reform_w = _uniform(kr_w, (64, C_in), rbound)   # (Cout, Cin), 1x1 conv
    reform_b = _uniform(kr_b, (64,), rbound)
    reform_w_t = reform_w.T.astype(jnp.bfloat16)

    x = jax.random.normal(kx, (B, C_in, H, W), dtype=jnp.float32)

    out = swin_converter_forward(x, [blk1, blk2], reform_w_t, reform_b)
    out = jax.block_until_ready(out)

    ref = _ref_swin_converter(x, [blk1, blk2], reform_w, reform_b)
    assert out.shape == (B, 64, 4, 4), out.shape
    # bf16 MXU operands through the whole stack vs f32 reference -> loose tol.
    assert jnp.allclose(out, ref, atol=5e-2, rtol=5e-2), \
        float(jnp.max(jnp.abs(out - ref)))

    print("KERNEL_OK")
</pallas_src>

<mosaic_0001>
module attributes {stable_mosaic.version = 11 : i64} {
  func.func @_ln_qkv_kernel(%arg0: i32, %arg1: memref<512x32xf32, #tpu.memory_space<vmem>>, %arg2: memref<1x32xf32, #tpu.memory_space<vmem>>, %arg3: memref<1x32xf32, #tpu.memory_space<vmem>>, %arg4: memref<32x96xbf16, #tpu.memory_space<vmem>>, %arg5: memref<1x96xf32, #tpu.memory_space<vmem>>, %arg6: memref<512x96xbf16, #tpu.memory_space<vmem>>) attributes {dimension_semantics = [#tpu.dimension_semantics<parallel>], iteration_bounds = array<i64: 1>, scalar_prefetch = 0 : i64, scratch_operands = 0 : i64, tpu.core_type = #tpu.core_type<tc>, window_params = [{transform_indices = @transform_0, window_bounds = array<i64: 512, 32>}, {pipeline_mode = #tpu.pipeline_mode<synchronous>, transform_indices = @transform_1, window_bounds = array<i64: 1, 32>}, {pipeline_mode = #tpu.pipeline_mode<synchronous>, transform_indices = @transform_2, window_bounds = array<i64: 1, 32>}, {pipeline_mode = #tpu.pipeline_mode<synchronous>, transform_indices = @transform_3, window_bounds = array<i64: 32, 96>}, {pipeline_mode = #tpu.pipeline_mode<synchronous>, transform_indices = @transform_4, window_bounds = array<i64: 1, 96>}, {transform_indices = @transform_5, window_bounds = array<i64: 512, 96>}]} {
    %c0 = arith.constant 0 : index
    %c0_0 = arith.constant 0 : index
    %0 = vector.load %arg1[%c0, %c0_0] : memref<512x32xf32, #tpu.memory_space<vmem>>, vector<512x32xf32>
    %c0_1 = arith.constant 0 : index
    %c0_2 = arith.constant 0 : index
    %1 = vector.load %arg2[%c0_1, %c0_2] : memref<1x32xf32, #tpu.memory_space<vmem>>, vector<1x32xf32>
    %c0_3 = arith.constant 0 : index
    %c0_4 = arith.constant 0 : index
    %2 = vector.load %arg3[%c0_3, %c0_4] : memref<1x32xf32, #tpu.memory_space<vmem>>, vector<1x32xf32>
    %cst = arith.constant dense<0.000000e+00> : vector<512xf32>
    %3 = vector.multi_reduction <add>, %0, %cst [1] : vector<512x32xf32> to vector<512xf32>
    %4 = vector.shape_cast %3 : vector<512xf32> to vector<512x1xf32>
    %cst_5 = arith.constant 3.200000e+01 : f32
    %5 = vector.broadcast %cst_5 : f32 to vector<512x1xf32>
    %6 = arith.divf %4, %5 : vector<512x1xf32>
    %7 = vector.broadcast %6 : vector<512x1xf32> to vector<512x32xf32>
    %8 = arith.subf %0, %7 : vector<512x32xf32>
    %9 = arith.mulf %8, %8 : vector<512x32xf32>
    %cst_6 = arith.constant dense<0.000000e+00> : vector<512xf32>
    %10 = vector.multi_reduction <add>, %9, %cst_6 [1] : vector<512x32xf32> to vector<512xf32>
    %11 = vector.shape_cast %10 : vector<512xf32> to vector<512x1xf32>
    %cst_7 = arith.constant 3.200000e+01 : f32
    %12 = vector.broadcast %cst_7 : f32 to vector<512x1xf32>
    %13 = arith.divf %11, %12 : vector<512x1xf32>
    %cst_8 = arith.constant 9.99999974E-6 : f32
    %14 = vector.broadcast %cst_8 : f32 to vector<512x1xf32>
    %15 = arith.addf %13, %14 : vector<512x1xf32>
    %16 = math.rsqrt %15 : vector<512x1xf32>
    %17 = vector.broadcast %16 : vector<512x1xf32> to vector<512x32xf32>
    %18 = arith.mulf %8, %17 : vector<512x32xf32>
    %19 = vector.broadcast %1 : vector<1x32xf32> to vector<512x32xf32>
    %20 = arith.mulf %18, %19 : vector<512x32xf32>
    %21 = vector.broadcast %2 : vector<1x32xf32> to vector<512x32xf32>
    %22 = arith.addf %20, %21 : vector<512x32xf32>
    %23 = arith.truncf %22 : vector<512x32xf32> to vector<512x32xbf16>
    %c0_9 = arith.constant 0 : index
    %c0_10 = arith.constant 0 : index
    %24 = vector.load %arg4[%c0_9, %c0_10] : memref<32x96xbf16, #tpu.memory_space<vmem>>, vector<32x96xbf16>
    %cst_11 = arith.constant dense<0.000000e+00> : vector<512x96xf32>
    %25 = tpu.matmul %23, %24, %cst_11 {dimension_numbers = #tpu.dot_dimension_numbers<[1], [0], [0], [1], [0, 0, 1, 1], [], []>} : vector<512x32xbf16>, vector<32x96xbf16>, vector<512x96xf32> -> vector<512x96xf32>
    %c0_12 = arith.constant 0 : index
    %c0_13 = arith.constant 0 : index
    %26 = vector.load %arg5[%c0_12, %c0_13] : memref<1x96xf32, #tpu.memory_space<vmem>>, vector<1x96xf32>
    %27 = vector.broadcast %26 : vector<1x96xf32> to vector<512x96xf32>
    %28 = arith.addf %25, %27 : vector<512x96xf32>
    %29 = arith.truncf %28 : vector<512x96xf32> to vector<512x96xbf16>
    %c0_14 = arith.constant 0 : index
    %c0_15 = arith.constant 0 : index
    %30 = vector.load %arg6[%c0_14, %c0_15] : memref<512x96xbf16, #tpu.memory_space<vmem>>, vector<512x96xbf16>
    tpu.vector_store %arg6[%c0_14, %c0_15], %29 {strides = array<i32>} : memref<512x96xbf16, #tpu.memory_space<vmem>>, vector<512x96xbf16>,
    return
  }
  func.func @transform_0(%arg0: i32) -> (i32, i32) {
    %c0_i32 = arith.constant 0 : i32
    %c0_i32_0 = arith.constant 0 : i32
    return %arg0, %c0_i32 : i32, i32
  }
  func.func @transform_1(%arg0: i32) -> (i32, i32) {
    %c0_i32 = arith.constant 0 : i32
    %c0_i32_0 = arith.constant 0 : i32
    %c0_i32_1 = arith.constant 0 : i32
    return %c0_i32, %c0_i32_0 : i32, i32
  }
  func.func @transform_2(%arg0: i32) -> (i32, i32) {
    %c0_i32 = arith.constant 0 : i32
    %c0_i32_0 = arith.constant 0 : i32
    %c0_i32_1 = arith.constant 0 : i32
    return %c0_i32, %c0_i32_0 : i32, i32
  }
  func.func @transform_3(%arg0: i32) -> (i32, i32) {
    %c0_i32 = arith.constant 0 : i32
    %c0_i32_0 = arith.constant 0 : i32
    %c0_i32_1 = arith.constant 0 : i32
    return %c0_i32, %c0_i32_0 : i32, i32
  }
  func.func @transform_4(%arg0: i32) -> (i32, i32) {
    %c0_i32 = arith.constant 0 : i32
    %c0_i32_0 = arith.constant 0 : i32
    %c0_i32_1 = arith.constant 0 : i32
    return %c0_i32, %c0_i32_0 : i32, i32
  }
  func.func @transform_5(%arg0: i32) -> (i32, i32) {
    %c0_i32 = arith.constant 0 : i32
    %c0_i32_0 = arith.constant 0 : i32
    return %arg0, %c0_i32 : i32, i32
  }
}

</mosaic_0001>

<bundles_post_ra>
// kernel: tpu_custom_call.1
= control target key start
LH: loop header
LB: loop body
LE: loop exit
PB: predicated region body
PF: predicated region fallthrough
CT: control target
= control target key end

     0   :  { %vm87_vm0 = vcmask 261120   ;;  %vm1757_vm1 = vcmask 781312   ;;  %s3652_s0 = inlined_call_operand.vmem [shape: f32[512,32], index: 0, kind: input, shape index: {}]   ;;  %s3653_s3 = inlined_call_operand.vmem [shape: bf16[32,96], index: 3, kind: input, shape index: {}]   ;;  %s3654_s1 = inlined_call_operand.vmem [shape: f32[1,32], index: 1, kind: input, shape index: {}]   ;;  %s3655_s2 = inlined_call_operand.vmem [shape: f32[1,32], index: 2, kind: input, shape index: {}]   ;;  %s3656_s4 = inlined_call_operand.vmem [shape: f32[1,96], index: 4, kind: input, shape index: {}]   ;;  %s3657_s5 = inlined_call_operand.vmem [shape: bf16[512,96], index: 5, kind: output, shape index: {}]  }
   0x1   :  { %v2262_v0 = vld [vmem:[%s3652_s0] sm:$0xff]  ;;  %v2272_v2 = vld [vmem:[%s3652_s0 + $0x8] sm:$0xff]  ;;  %v2290_v8 = vld [vmem:[%s3652_s0 + $0x10] sm:$0xff] }
   0x2   :  { %v2267_v1 = vld [vmem:[%s3652_s0 + $0x100] sm:$0xff]  ;;  %v88_v3 = vsel %vm87_vm0, %v2262_v0, 0.0  ;;  %v2281_v5 = vld [vmem:[%s3652_s0 + $0x108] sm:$0xff]  ;;  %v91_v6 = vsel %vm87_vm0, %v2272_v2, 0.0  ;;  %v2295_v9 = vld [vmem:[%s3652_s0 + $0x18] sm:$0xff]  ;;  %v94_v10 = vsel %vm87_vm0, %v2290_v8, 0.0 }
   0x3   :  { %v184_v4 = vsel %vm87_vm0, %v2267_v1, 0.0  ;;  %89 = vadd.xlane.f32.xlu0 %v88_v3  ;;  %v187_v7 = vsel %vm87_vm0, %v2281_v5, 0.0  ;;  %v97_v11 = vsel %vm87_vm0, %v2295_v9, 0.0  ;;  %v2304_v12 = vld [vmem:[%s3652_s0 + $0x110] sm:$0xff]  ;;  %v2309_v13 = vld [vmem:[%s3652_s0 + $0x118] sm:$0xff]  ;;  %v2318_v16 = vld [vmem:[%s3652_s0 + $0x20] sm:$0xff] }
   0x4   :  { %185 = vadd.xlane.f32.xlu1 %v184_v4  ;;  %v190_v14 = vsel %vm87_vm0, %v2304_v12, 0.0  ;;  %v193_v15 = vsel %vm87_vm0, %v2309_v13, 0.0  ;;  %v2323_v17 = vld [vmem:[%s3652_s0 + $0x28] sm:$0xff]  ;;  %v100_v18 = vsel %vm87_vm0, %v2318_v16, 0.0  ;;  %v2332_v20 = vld [vmem:[%s3652_s0 + $0x120] sm:$0xff]  ;;  %v2346_v24 = vld [vmem:[%s3652_s0 + $0x30] sm:$0xff] }
   0x5   :  { %v103_v19 = vsel %vm87_vm0, %v2323_v17, 0.0  ;;  %v2337_v21 = vld [vmem:[%s3652_s0 + $0x128] sm:$0xff]  ;;  %v196_v22 = vsel %vm87_vm0, %v2332_v20, 0.0  ;;  %v2351_v25 = vld [vmem:[%s3652_s0 + $0x38] sm:$0xff]  ;;  %v106_v26 = vsel %vm87_vm0, %v2346_v24, 0.0  ;;  %v2360_v28 = vld [vmem:[%s3652_s0 + $0x130] sm:$0xff] }
   0x6   :  { %v199_v23 = vsel %vm87_vm0, %v2337_v21, 0.0  ;;  %v109_v27 = vsel %vm87_vm0, %v2351_v25, 0.0  ;;  %v2365_v29 = vld [vmem:[%s3652_s0 + $0x138] sm:$0xff]  ;;  %v202_v30 = vsel %vm87_vm0, %v2360_v28, 0.0  ;;  %v2374_v32 = vld [vmem:[%s3652_s0 + $0x40] sm:$0xff]  ;;  %v2379_v33 = vld [vmem:[%s3652_s0 + $0x48] sm:$0xff] }
   0x7   :  { %92 = vadd.xlane.f32.xlu0 %v91_v6  ;;  %v205_v31 = vsel %vm87_vm0, %v2365_v29, 0.0  ;;  %v112_v34 = vsel %vm87_vm0, %v2374_v32, 0.0  ;;  %v115_v35 = vsel %vm87_vm0, %v2379_v33, 0.0  ;;  %v2388_v36 = vld [vmem:[%s3652_s0 + $0x140] sm:$0xff]  ;;  %v2393_v37 = vld [vmem:[%s3652_s0 + $0x148] sm:$0xff]  ;;  %v2402_v40 = vld [vmem:[%s3652_s0 + $0x50] sm:$0xff] }
   0x8   :  { %188 = vadd.xlane.f32.xlu1 %v187_v7  ;;  %v208_v38 = vsel %vm87_vm0, %v2388_v36, 0.0  ;;  %v211_v39 = vsel %vm87_vm0, %v2393_v37, 0.0  ;;  %v2407_v41 = vld [vmem:[%s3652_s0 + $0x58] sm:$0xff]  ;;  %v118_v42 = vsel %vm87_vm0, %v2402_v40, 0.0  ;;  %v2416_v44 = vld [vmem:[%s3652_s0 + $0x150] sm:$0xff]  ;;  %v2430_v48 = vld [vmem:[%s3652_s0 + $0x60] sm:$0xff] }
   0x9   :  { %v121_v43 = vsel %vm87_vm0, %v2407_v41, 0.0  ;;  %v2421_v45 = vld [vmem:[%s3652_s0 + $0x158] sm:$0xff]  ;;  %v214_v46 = vsel %vm87_vm0, %v2416_v44, 0.0  ;;  %v2435_v49 = vld [vmem:[%s3652_s0 + $0x68] sm:$0xff]  ;;  %v124_v50 = vsel %vm87_vm0, %v2430_v48, 0.0  ;;  %v2444_v52 = vld [vmem:[%s3652_s0 + $0x160] sm:$0xff] }
   0xa   :  { %v217_v47 = vsel %vm87_vm0, %v2421_v45, 0.0  ;;  %v127_v51 = vsel %vm87_vm0, %v2435_v49, 0.0  ;;  %v2449_v53 = vld [vmem:[%s3652_s0 + $0x168] sm:$0xff]  ;;  %v220_v54 = vsel %vm87_vm0, %v2444_v52, 0.0  ;;  %v2458_v56 = vld [vmem:[%s3652_s0 + $0x70] sm:$0xff]  ;;  %v2463_v57 = vld [vmem:[%s3652_s0 + $0x78] sm:$0xff] }
   0xb   :  { %95 = vadd.xlane.f32.xlu0 %v94_v10  ;;  %v223_v55 = vsel %vm87_vm0, %v2449_v53, 0.0  ;;  %v130_v58 = vsel %vm87_vm0, %v2458_v56, 0.0  ;;  %v133_v59 = vsel %vm87_vm0, %v2463_v57, 0.0  ;;  %v2472_v60 = vld [vmem:[%s3652_s0 + $0x170] sm:$0xff]  ;;  %v2477_v61 = vld [vmem:[%s3652_s0 + $0x178] sm:$0xff]  ;;  %v2486_v3 = vld [vmem:[%s3652_s0 + $0x80] sm:$0xff] }
   0xc   :  { %98 = vadd.xlane.f32.xlu1 %v97_v11  ;;  %v226_v62 = vsel %vm87_vm0, %v2472_v60, 0.0  ;;  %v229_v63 = vsel %vm87_vm0, %v2477_v61, 0.0  ;;  %v2491_v4 = vld [vmem:[%s3652_s0 + $0x88] sm:$0xff]  ;;  %v136_v6 = vsel %vm87_vm0, %v2486_v3, 0.0  ;;  %v2500_v10 = vld [vmem:[%s3652_s0 + $0x180] sm:$0xff] }
   0xd   :  { %v139_v7 = vsel %vm87_vm0, %v2491_v4, 0.0  ;;  %v2505_v11 = vld [vmem:[%s3652_s0 + $0x188] sm:$0xff] }
   0xf   :  { %191 = vadd.xlane.f32.xlu0 %v190_v14  ;;  %v232_v14 = vsel %vm87_vm0, %v2500_v10, 0.0 }
  0x10   :  { %194 = vadd.xlane.f32.xlu1 %v193_v15  ;;  %v235_v15 = vsel %vm87_vm0, %v2505_v11, 0.0 }
  0x13   :  { %101 = vadd.xlane.f32.xlu0 %v100_v18  ;;  %v2514_v18 = vld [vmem:[%s3652_s0 + $0x90] sm:$0xff] }
  0x14   :  { %104 = vadd.xlane.f32.xlu1 %v103_v19  ;;  %v2519_v19 = vld [vmem:[%s3652_s0 + $0x98] sm:$0xff] }
  0x17   :  { %197 = vadd.xlane.f32.xlu0 %v196_v22  ;;  %v142_v22 = vsel %vm87_vm0, %v2514_v18, 0.0 }
  0x18   :  { %200 = vadd.xlane.f32.xlu1 %v199_v23  ;;  %v145_v23 = vsel %vm87_vm0, %v2519_v19, 0.0 }
  0x1b   :  { %107 = vadd.xlane.f32.xlu0 %v106_v26  ;;  %v2528_v26 = vld [vmem:[%s3652_s0 + $0x190] sm:$0xff] }
  0x1c   :  { %110 = vadd.xlane.f32.xlu1 %v109_v27  ;;  %v2533_v27 = vld [vmem:[%s3652_s0 + $0x198] sm:$0xff] }
  0x1f   :  { %203 = vadd.xlane.f32.xlu0 %v202_v30  ;;  %v238_v30 = vsel %vm87_vm0, %v2528_v26, 0.0 }
  0x20   :  { %206 = vadd.xlane.f32.xlu1 %v205_v31  ;;  %v241_v31 = vsel %vm87_vm0, %v2533_v27, 0.0 }
  0x23   :  { %113 = vadd.xlane.f32.xlu0 %v112_v34  ;;  %v2542_v34 = vld [vmem:[%s3652_s0 + $0xa0] sm:$0xff] }
  0x24   :  { %116 = vadd.xlane.f32.xlu1 %v115_v35  ;;  %v2547_v35 = vld [vmem:[%s3652_s0 + $0xa8] sm:$0xff] }
  0x27   :  { %209 = vadd.xlane.f32.xlu0 %v208_v38  ;;  %v148_v38 = vsel %vm87_vm0, %v2542_v34, 0.0 }
  0x28   :  { %212 = vadd.xlane.f32.xlu1 %v211_v39  ;;  %v151_v39 = vsel %vm87_vm0, %v2547_v35, 0.0 }
  0x2b   :  { %119 = vadd.xlane.f32.xlu0 %v118_v42  ;;  %v2556_v42 = vld [vmem:[%s3652_s0 + $0x1a0] sm:$0xff] }
  0x2c   :  { %122 = vadd.xlane.f32.xlu1 %v121_v43  ;;  %v2561_v43 = vld [vmem:[%s3652_s0 + $0x1a8] sm:$0xff] }
  0x2f   :  { %215 = vadd.xlane.f32.xlu0 %v214_v46  ;;  %v244_v46 = vsel %vm87_vm0, %v2556_v42, 0.0 }
  0x30   :  { %218 = vadd.xlane.f32.xlu1 %v217_v47  ;;  %v247_v47 = vsel %vm87_vm0, %v2561_v43, 0.0 }
  0x33   :  { %125 = vadd.xlane.f32.xlu0 %v124_v50  ;;  %v2570_v50 = vld [vmem:[%s3652_s0 + $0xb0] sm:$0xff] }
  0x34   :  { %128 = vadd.xlane.f32.xlu1 %v127_v51  ;;  %v2575_v51 = vld [vmem:[%s3652_s0 + $0xb8] sm:$0xff] }
  0x37   :  { %221 = vadd.xlane.f32.xlu0 %v220_v54  ;;  %v154_v54 = vsel %vm87_vm0, %v2570_v50, 0.0 }
  0x38   :  { %224 = vadd.xlane.f32.xlu1 %v223_v55  ;;  %v157_v55 = vsel %vm87_vm0, %v2575_v51, 0.0 }
  0x3b   :  { %131 = vadd.xlane.f32.xlu0 %v130_v58  ;;  %v2584_v58 = vld [vmem:[%s3652_s0 + $0x1b0] sm:$0xff] }
  0x3c   :  { %134 = vadd.xlane.f32.xlu1 %v133_v59  ;;  %v2589_v59 = vld [vmem:[%s3652_s0 + $0x1b8] sm:$0xff] }
  0x3f   :  { %227 = vadd.xlane.f32.xlu0 %v226_v62  ;;  %v250_v62 = vsel %vm87_vm0, %v2584_v58, 0.0 }
  0x40   :  { %230 = vadd.xlane.f32.xlu1 %v229_v63  ;;  %v253_v63 = vsel %vm87_vm0, %v2589_v59, 0.0 }
  0x43   :  { %137 = vadd.xlane.f32.xlu0 %v136_v6  ;;  %v2598_v6 = vld [vmem:[%s3652_s0 + $0xc0] sm:$0xff] }
  0x44   :  { %140 = vadd.xlane.f32.xlu1 %v139_v7  ;;  %v2603_v7 = vld [vmem:[%s3652_s0 + $0xc8] sm:$0xff] }
  0x47   :  { %233 = vadd.xlane.f32.xlu0 %v232_v14  ;;  %v160_v14 = vsel %vm87_vm0, %v2598_v6, 0.0 }
  0x48   :  { %236 = vadd.xlane.f32.xlu1 %v235_v15  ;;  %v163_v15 = vsel %vm87_vm0, %v2603_v7, 0.0 }
  0x4b   :  { %143 = vadd.xlane.f32.xlu0 %v142_v22  ;;  %v2612_v22 = vld [vmem:[%s3652_s0 + $0x1c0] sm:$0xff] }
  0x4c   :  { %146 = vadd.xlane.f32.xlu1 %v145_v23  ;;  %3692 = vst [vmem:[#allocation2_spill] sm:$0xff] %v2612_v22  ;;  %v2617_v23 = vld [vmem:[%s3652_s0 + $0x1c8] sm:$0xff] }
  0x4d   :  { %3693 = vst [vmem:[#allocation3_spill] sm:$0xff] %v2617_v23 }
  0x4f   :  { %239 = vadd.xlane.f32.xlu0 %v238_v30  ;;  %v256_v30 = vsel %vm87_vm0, %v2612_v22, 0.0 }
  0x50   :  { %242 = vadd.xlane.f32.xlu1 %v241_v31  ;;  %v259_v31 = vsel %vm87_vm0, %v2617_v23, 0.0 }
  0x53   :  { %149 = vadd.xlane.f32.xlu0 %v148_v38  ;;  %v2626_v38 = vld [vmem:[%s3652_s0 + $0xd0] sm:$0xff] }
  0x54   :  { %152 = vadd.xlane.f32.xlu1 %v151_v39  ;;  %3694 = vst [vmem:[#allocation4_spill] sm:$0xff] %v2626_v38  ;;  %v2631_v39 = vld [vmem:[%s3652_s0 + $0xd8] sm:$0xff] }
  0x55   :  { %3695 = vst [vmem:[#allocation5_spill] sm:$0xff] %v2631_v39 }
  0x57   :  { %245 = vadd.xlane.f32.xlu0 %v244_v46  ;;  %v166_v46 = vsel %vm87_vm0, %v2626_v38, 0.0 }
  0x58   :  { %248 = vadd.xlane.f32.xlu1 %v247_v47  ;;  %v169_v47 = vsel %vm87_vm0, %v2631_v39, 0.0 }
  0x5b   :  { %155 = vadd.xlane.f32.xlu0 %v154_v54  ;;  %v2640_v54 = vld [vmem:[%s3652_s0 + $0x1d0] sm:$0xff] }
  0x5c   :  { %158 = vadd.xlane.f32.xlu1 %v157_v55  ;;  %3696 = vst [vmem:[#allocation6_spill] sm:$0xff] %v2640_v54  ;;  %v2645_v55 = vld [vmem:[%s3652_s0 + $0x1d8] sm:$0xff] }
  0x5d   :  { %3697 = vst [vmem:[#allocation7_spill] sm:$0xff] %v2645_v55 }
  0x5f   :  { %251 = vadd.xlane.f32.xlu0 %v250_v62  ;;  %v262_v62 = vsel %vm87_vm0, %v2640_v54, 0.0 }
  0x60   :  { %254 = vadd.xlane.f32.xlu1 %v253_v63  ;;  %v265_v63 = vsel %vm87_vm0, %v2645_v55, 0.0 }
  0x63   :  { %161 = vadd.xlane.f32.xlu0 %v160_v14  ;;  %v2654_v14 = vld [vmem:[%s3652_s0 + $0xe0] sm:$0xff] }
  0x64   :  { %164 = vadd.xlane.f32.xlu1 %v163_v15  ;;  %3698 = vst [vmem:[#allocation8_spill] sm:$0xff] %v2654_v14  ;;  %v2659_v15 = vld [vmem:[%s3652_s0 + $0xe8] sm:$0xff] }
  0x65   :  { %3699 = vst [vmem:[#allocation9_spill] sm:$0xff] %v2659_v15 }
  0x67   :  { %257 = vadd.xlane.f32.xlu0 %v256_v30  ;;  %v172_v30 = vsel %vm87_vm0, %v2654_v14, 0.0  ;;  %v2687_v14 = vld [vmem:[%s3652_s0 + $0xf8] sm:$0xff] }
  0x68   :  { %260 = vadd.xlane.f32.xlu1 %v259_v31  ;;  %v175_v31 = vsel %vm87_vm0, %v2659_v15, 0.0  ;;  %v2682_v15 = vld [vmem:[%s3652_s0 + $0xf0] sm:$0xff]  ;;  %3703 = vst [vmem:[#allocation13_spill] sm:$0xff] %v2687_v14 }
  0x69   :  { %3702 = vst [vmem:[#allocation12_spill] sm:$0xff] %v2682_v15 }
  0x6b   :  { %167 = vadd.xlane.f32.xlu0 %v166_v46  ;;  %v2668_v46 = vld [vmem:[%s3652_s0 + $0x1e0] sm:$0xff] }
  0x6c   :  { %170 = vadd.xlane.f32.xlu1 %v169_v47  ;;  %3700 = vst [vmem:[#allocation10_spill] sm:$0xff] %v2668_v46  ;;  %v2673_v47 = vld [vmem:[%s3652_s0 + $0x1e8] sm:$0xff] }
  0x6d   :  { %3701 = vst [vmem:[#allocation11_spill] sm:$0xff] %v2673_v47 }
  0x6f   :  { %263 = vadd.xlane.f32.xlu0 %v262_v62  ;;  %v268_v62 = vsel %vm87_vm0, %v2668_v46, 0.0  ;;  %v2701_v46 = vld [vmem:[%s3652_s0 + $0x1f8] sm:$0xff] }
  0x70   :  { %266 = vadd.xlane.f32.xlu1 %v265_v63  ;;  %v271_v63 = vsel %vm87_vm0, %v2673_v47, 0.0  ;;  %v2696_v47 = vld [vmem:[%s3652_s0 + $0x1f0] sm:$0xff] }
  0x71   :  { %3704 = vst [vmem:[#allocation14_spill] sm:$0xff] %v2696_v47 }
  0x73   :  { %173 = vadd.xlane.f32.xlu0 %v172_v30  ;;  %v178_v30 = vsel %vm87_vm0, %v2682_v15, 0.0 }
  0x74   :  { %176 = vadd.xlane.f32.xlu1 %v175_v31  ;;  %v181_v31 = vsel %vm87_vm0, %v2687_v14, 0.0 }
  0x77   :  { %269 = vadd.xlane.f32.xlu0 %v268_v62  ;;  %v274_v62 = vsel %vm87_vm0, %v2696_v47, 0.0 }
  0x78   :  { %272 = vadd.xlane.f32.xlu1 %v271_v63  ;;  %v277_v63 = vsel %vm87_vm0, %v2701_v46, 0.0 }
  0x7b   :  { %179 = vadd.xlane.f32.xlu0 %v178_v30 }
  0x7c   :  { %182 = vadd.xlane.f32.xlu1 %v181_v31 }
  0x7f   :  { %275 = vadd.xlane.f32.xlu0 %v274_v62 }
  0x80   :  { %278 = vadd.xlane.f32.xlu1 %v277_v63 }
  0x8c   :  { %v90_v14 = vpop.xlane.xlu0 %89 }
  0x8d   :  { %v186_v15 = vpop.xlane.xlu1 %185  ;;  %v281_v55 = vmul.f32 0.03125, %v90_v14 }
  0x8e   :  { %v313_v54 = vmul.f32 0.03125, %v186_v15 }
  0x8f   :  { %v2708_v39 = vsub.f32 %v2262_v0, %v281_v55 }
  0x90   :  { %v2711_v38 = vsub.f32 %v2267_v1, %v313_v54  ;;  %v93_v30 = vpop.xlane.xlu0 %92 }
  0x91   :  { %v189_v31 = vpop.xlane.xlu1 %188  ;;  %v282_v23 = vmul.f32 0.03125, %v93_v30  ;;  %v409_v47 = vmul.f32 %v2708_v39, %v2708_v39 }
  0x92   :  { %3705 = vst [vmem:[#allocation15_spill] sm:$0xff] %v2711_v38  ;;  %v314_v22 = vmul.f32 0.03125, %v189_v31  ;;  %v441_v62 = vmul.f32 %v2711_v38, %v2711_v38 }
  0x93   :  { %v2718_v63 = vsub.f32 %v2272_v2, %v282_v23  ;;  %v473_v0 = vsel %vm87_vm0, %v409_v47, 0.0 }
  0x94   :  { %v2721_v14 = vsub.f32 %v2281_v5, %v314_v22  ;;  %474 = vadd.xlane.f32.xlu0 %v473_v0  ;;  %v96_v1 = vpop.xlane.xlu0 %95  ;;  %v569_v55 = vsel %vm87_vm0, %v441_v62, 0.0 }
  0x95   :  { %v99_v54 = vpop.xlane.xlu1 %98  ;;  %v283_v15 = vmul.f32 0.03125, %v96_v1  ;;  %v410_v31 = vmul.f32 %v2718_v63, %v2718_v63 }
  0x96   :  { %v284_v30 = vmul.f32 0.03125, %v99_v54  ;;  %v442_v38 = vmul.f32 %v2721_v14, %v2721_v14 }
  0x97   :  { %v2730_v2 = vsub.f32 %v2290_v8, %v283_v15  ;;  %v476_v22 = vsel %vm87_vm0, %v410_v31, 0.0 }
  0x98   :  { %v2733_v5 = vsub.f32 %v2295_v9, %v284_v30  ;;  %570 = vadd.xlane.f32.xlu0 %v569_v55  ;;  %477 = vadd.xlane.f32.xlu1 %v476_v22  ;;  %v192_v23 = vpop.xlane.xlu0 %191  ;;  %v572_v62 = vsel %vm87_vm0, %v442_v38, 0.0 }
  0x99   :  { %v195_v47 = vpop.xlane.xlu1 %194  ;;  %v315_v0 = vmul.f32 0.03125, %v192_v23  ;;  %v411_v54 = vmul.f32 %v2730_v2, %v2730_v2 }
  0x9a   :  { %v316_v1 = vmul.f32 0.03125, %v195_v47  ;;  %v412_v8 = vmul.f32 %v2733_v5, %v2733_v5 }
  0x9b   :  { %v2742_v15 = vsub.f32 %v2304_v12, %v315_v0  ;;  %v479_v55 = vsel %vm87_vm0, %v411_v54, 0.0 }
  0x9c   :  { %v2745_v9 = vsub.f32 %v2309_v13, %v316_v1  ;;  %573 = vadd.xlane.f32.xlu1 %v572_v62  ;;  %480 = vadd.xlane.f32.xlu0 %v479_v55  ;;  %v102_v30 = vpop.xlane.xlu0 %101  ;;  %v482_v31 = vsel %vm87_vm0, %v412_v8, 0.0 }
  0x9d   :  { %v105_v38 = vpop.xlane.xlu1 %104  ;;  %v285_v22 = vmul.f32 0.03125, %v102_v30  ;;  %v443_v47 = vmul.f32 %v2742_v15, %v2742_v15 }
  0x9e   :  { %v286_v23 = vmul.f32 0.03125, %v105_v38  ;;  %v444_v12 = vmul.f32 %v2745_v9, %v2745_v9 }
  0x9f   :  { %v2754_v0 = vsub.f32 %v2318_v16, %v285_v22  ;;  %v575_v62 = vsel %vm87_vm0, %v443_v47, 0.0 }
  0xa0   :  { %v2757_v13 = vsub.f32 %v2323_v17, %v286_v23  ;;  %483 = vadd.xlane.f32.xlu1 %v482_v31  ;;  %576 = vadd.xlane.f32.xlu0 %v575_v62  ;;  %v198_v1 = vpop.xlane.xlu0 %197  ;;  %v578_v8 = vsel %vm87_vm0, %v444_v12, 0.0 }
  0xa1   :  { %v201_v54 = vpop.xlane.xlu1 %200  ;;  %v317_v55 = vmul.f32 0.03125, %v198_v1  ;;  %v413_v38 = vmul.f32 %v2754_v0, %v2754_v0 }
  0xa2   :  { %v318_v30 = vmul.f32 0.03125, %v201_v54  ;;  %v414_v16 = vmul.f32 %v2757_v13, %v2757_v13 }
  0xa3   :  { %v2766_v22 = vsub.f32 %v2332_v20, %v317_v55  ;;  %v485_v31 = vsel %vm87_vm0, %v413_v38, 0.0 }
  0xa4   :  { %v2769_v17 = vsub.f32 %v2337_v21, %v318_v30  ;;  %579 = vadd.xlane.f32.xlu1 %v578_v8  ;;  %486 = vadd.xlane.f32.xlu0 %v485_v31  ;;  %v108_v23 = vpop.xlane.xlu0 %107  ;;  %v488_v12 = vsel %vm87_vm0, %v414_v16, 0.0 }
  0xa5   :  { %v111_v47 = vpop.xlane.xlu1 %110  ;;  %v287_v62 = vmul.f32 0.03125, %v108_v23  ;;  %v445_v54 = vmul.f32 %v2766_v22, %v2766_v22 }
  0xa6   :  { %v288_v1 = vmul.f32 0.03125, %v111_v47  ;;  %v446_v20 = vmul.f32 %v2769_v17, %v2769_v17 }
  0xa7   :  { %v2778_v55 = vsub.f32 %v2346_v24, %v287_v62  ;;  %v581_v8 = vsel %vm87_vm0, %v445_v54, 0.0 }
  0xa8   :  { %v2781_v21 = vsub.f32 %v2351_v25, %v288_v1  ;;  %489 = vadd.xlane.f32.xlu1 %v488_v12  ;;  %582 = vadd.xlane.f32.xlu0 %v581_v8  ;;  %v204_v30 = vpop.xlane.xlu0 %203  ;;  %v584_v16 = vsel %vm87_vm0, %v446_v20, 0.0 }
  0xa9   :  { %v207_v38 = vpop.xlane.xlu1 %206  ;;  %v319_v31 = vmul.f32 0.03125, %v204_v30  ;;  %v415_v47 = vmul.f32 %v2778_v55, %v2778_v55 }
  0xaa   :  { %v320_v23 = vmul.f32 0.03125, %v207_v38  ;;  %v416_v24 = vmul.f32 %v2781_v21, %v2781_v21 }
  0xab   :  { %v2790_v62 = vsub.f32 %v2360_v28, %v319_v31  ;;  %v491_v12 = vsel %vm87_vm0, %v415_v47, 0.0 }
  0xac   :  { %v2793_v25 = vsub.f32 %v2365_v29, %v320_v23  ;;  %585 = vadd.xlane.f32.xlu1 %v584_v16  ;;  %492 = vadd.xlane.f32.xlu0 %v491_v12  ;;  %v114_v1 = vpop.xlane.xlu0 %113  ;;  %v494_v20 = vsel %vm87_vm0, %v416_v24, 0.0 }
  0xad   :  { %v117_v54 = vpop.xlane.xlu1 %116  ;;  %v289_v8 = vmul.f32 0.03125, %v114_v1  ;;  %v447_v38 = vmul.f32 %v2790_v62, %v2790_v62 }
  0xae   :  { %v290_v30 = vmul.f32 0.03125, %v117_v54  ;;  %v448_v28 = vmul.f32 %v2793_v25, %v2793_v25 }
  0xaf   :  { %v2802_v31 = vsub.f32 %v2374_v32, %v289_v8  ;;  %v587_v16 = vsel %vm87_vm0, %v447_v38, 0.0 }
  0xb0   :  { %v2805_v29 = vsub.f32 %v2379_v33, %v290_v30  ;;  %495 = vadd.xlane.f32.xlu1 %v494_v20  ;;  %588 = vadd.xlane.f32.xlu0 %v587_v16  ;;  %v210_v23 = vpop.xlane.xlu0 %209  ;;  %v590_v24 = vsel %vm87_vm0, %v448_v28, 0.0 }
  0xb1   :  { %v213_v47 = vpop.xlane.xlu1 %212  ;;  %v321_v12 = vmul.f32 0.03125, %v210_v23  ;;  %v417_v54 = vmul.f32 %v2802_v31, %v2802_v31 }
  0xb2   :  { %v322_v1 = vmul.f32 0.03125, %v213_v47  ;;  %v418_v32 = vmul.f32 %v2805_v29, %v2805_v29 }
  0xb3   :  { %v2814_v8 = vsub.f32 %v2388_v36, %v321_v12  ;;  %v497_v20 = vsel %vm87_vm0, %v417_v54, 0.0 }
  0xb4   :  { %v2817_v33 = vsub.f32 %v2393_v37, %v322_v1  ;;  %591 = vadd.xlane.f32.xlu1 %v590_v24  ;;  %498 = vadd.xlane.f32.xlu0 %v497_v20  ;;  %v120_v30 = vpop.xlane.xlu0 %119  ;;  %v500_v28 = vsel %vm87_vm0, %v418_v32, 0.0 }
  0xb5   :  { %v123_v38 = vpop.xlane.xlu1 %122  ;;  %v291_v16 = vmul.f32 0.03125, %v120_v30  ;;  %v449_v47 = vmul.f32 %v2814_v8, %v2814_v8 }
  0xb6   :  { %v292_v23 = vmul.f32 0.03125, %v123_v38  ;;  %v450_v36 = vmul.f32 %v2817_v33, %v2817_v33 }
  0xb7   :  { %v2826_v12 = vsub.f32 %v2402_v40, %v291_v16  ;;  %v593_v24 = vsel %vm87_vm0, %v449_v47, 0.0 }
  0xb8   :  { %v2829_v37 = vsub.f32 %v2407_v41, %v292_v23  ;;  %501 = vadd.xlane.f32.xlu1 %v500_v28  ;;  %594 = vadd.xlane.f32.xlu0 %v593_v24  ;;  %v216_v1 = vpop.xlane.xlu0 %215  ;;  %v596_v32 = vsel %vm87_vm0, %v450_v36, 0.0  ;;  %v2097_v24 = vld [vmem:[%s3653_s3 + $0x8] sm:$0xff]  }
  0xb9   :  { %v219_v54 = vpop.xlane.xlu1 %218  ;;  %v323_v20 = vmul.f32 0.03125, %v216_v1  ;;  %v419_v38 = vmul.f32 %v2826_v12, %v2826_v12  ;;  %2025 = vmatprep.subr.bf16.mxu0 %v2097_v24  ;;  %2093 = vmatprep.subr.bf16.mxu1 %v2097_v24 }
  0xba   :  { %v324_v30 = vmul.f32 0.03125, %v219_v54  ;;  %v420_v40 = vmul.f32 %v2829_v37, %v2829_v37  ;;  %2026 = vmatpush3.bf16.msra.mxu0 %v2097_v24  ;;  %2095 = vmatpush3.bf16.msra.mxu1 %v2097_v24 }
  0xbb   :  { %v2838_v16 = vsub.f32 %v2416_v44, %v323_v20  ;;  %v503_v28 = vsel %vm87_vm0, %v419_v38, 0.0  ;;  %v2098_v38 = vld [vmem:[%s3653_s3] sm:$0xff]  }
  0xbc   :  { %v2841_v41 = vsub.f32 %v2421_v45, %v324_v30  ;;  %597 = vadd.xlane.f32.xlu1 %v596_v32  ;;  %504 = vadd.xlane.f32.xlu0 %v503_v28  ;;  %v126_v23 = vpop.xlane.xlu0 %125  ;;  %v506_v36 = vsel %vm87_vm0, %v420_v40, 0.0 }
  0xbd   :  { %v129_v47 = vpop.xlane.xlu1 %128  ;;  %v293_v1 = vmul.f32 0.03125, %v126_v23  ;;  %v451_v44 = vmul.f32 %v2838_v16, %v2838_v16  ;;  %2027 = vmatprep.subr.bf16.mxu0 %v2098_v38  ;;  %2094 = vmatprep.subr.bf16.mxu1 %v2098_v38 }
  0xbe   :  { %v294_v54 = vmul.f32 0.03125, %v129_v47  ;;  %v452_v45 = vmul.f32 %v2841_v41, %v2841_v41  ;;  %2028 = vmatpush3.bf16.msra.mxu0 %v2098_v38  ;;  %2096 = vmatpush3.bf16.msra.mxu1 %v2098_v38 }
  0xbf   :  { %v2853_v32 = vsub.f32 %v2430_v48, %v293_v1  ;;  %v599_v30 = vsel %vm87_vm0, %v451_v44, 0.0 }
  0xc0   :  { %v2856_v20 = vsub.f32 %v2435_v49, %v294_v54  ;;  %507 = vadd.xlane.f32.xlu1 %v506_v36  ;;  %600 = vadd.xlane.f32.xlu0 %v599_v30  ;;  %v222_v40 = vpop.xlane.xlu0 %221  ;;  %v602_v23 = vsel %vm87_vm0, %v452_v45, 0.0 }
  0xc1   :  { %v225_v28 = vpop.xlane.xlu1 %224  ;;  %v325_v47 = vmul.f32 0.03125, %v222_v40  ;;  %v421_v49 = vmul.f32 %v2853_v32, %v2853_v32 }
  0xc2   :  { %3706 = vst [vmem:[#allocation16_spill] sm:$0xff] %v2856_v20  ;;  %v326_v48 = vmul.f32 0.03125, %v225_v28  ;;  %v422_v1 = vmul.f32 %v2856_v20, %v2856_v20 }
  0xc3   :  { %v2868_v54 = vsub.f32 %v2444_v52, %v325_v47  ;;  %v509_v24 = vsel %vm87_vm0, %v421_v49, 0.0 }
  0xc4   :  { %v2871_v36 = vsub.f32 %v2449_v53, %v326_v48  ;;  %603 = vadd.xlane.f32.xlu1 %v602_v23  ;;  %510 = vadd.xlane.f32.xlu0 %v509_v24  ;;  %v132_v44 = vpop.xlane.xlu0 %131  ;;  %v512_v30 = vsel %vm87_vm0, %v422_v1, 0.0 }
  0xc5   :  { %v135_v45 = vpop.xlane.xlu1 %134  ;;  %v295_v40 = vmul.f32 0.03125, %v132_v44  ;;  %v453_v20 = vmul.f32 %v2868_v54, %v2868_v54 }
  0xc6   :  { %v296_v28 = vmul.f32 0.03125, %v135_v45  ;;  %v454_v52 = vmul.f32 %v2871_v36, %v2871_v36 }
  0xc7   :  { %v2880_v53 = vsub.f32 %v2458_v56, %v295_v40  ;;  %v605_v38 = vsel %vm87_vm0, %v453_v20, 0.0 }
  0xc8   :  { %v2883_v47 = vsub.f32 %v2463_v57, %v296_v28  ;;  %513 = vadd.xlane.f32.xlu1 %v512_v30  ;;  %606 = vadd.xlane.f32.xlu0 %v605_v38  ;;  %v228_v23 = vpop.xlane.xlu0 %227  ;;  %v608_v49 = vsel %vm87_vm0, %v454_v52, 0.0 }
  0xc9   :  { %v231_v48 = vpop.xlane.xlu1 %230  ;;  %v327_v1 = vmul.f32 0.03125, %v228_v23  ;;  %v423_v44 = vmul.f32 %v2880_v53, %v2880_v53 }
  0xca   :  { %v328_v24 = vmul.f32 0.03125, %v231_v48  ;;  %v424_v56 = vmul.f32 %v2883_v47, %v2883_v47 }
  0xcb   :  { %v2892_v45 = vsub.f32 %v2472_v60, %v327_v1  ;;  %v515_v20 = vsel %vm87_vm0, %v423_v44, 0.0 }
  0xcc   :  { %v2895_v57 = vsub.f32 %v2477_v61, %v328_v24  ;;  %609 = vadd.xlane.f32.xlu1 %v608_v49  ;;  %516 = vadd.xlane.f32.xlu0 %v515_v20  ;;  %v138_v30 = vpop.xlane.xlu0 %137  ;;  %v518_v28 = vsel %vm87_vm0, %v424_v56, 0.0 }
  0xcd   :  { %v141_v40 = vpop.xlane.xlu1 %140  ;;  %v297_v52 = vmul.f32 0.03125, %v138_v30  ;;  %v455_v23 = vmul.f32 %v2892_v45, %v2892_v45 }
  0xce   :  { %v298_v38 = vmul.f32 0.03125, %v141_v40  ;;  %v456_v60 = vmul.f32 %v2895_v57, %v2895_v57 }
  0xcf   :  { %v2904_v48 = vsub.f32 %v2486_v3, %v297_v52  ;;  %v611_v49 = vsel %vm87_vm0, %v455_v23, 0.0 }
  0xd0   :  { %v2907_v61 = vsub.f32 %v2491_v4, %v298_v38  ;;  %519 = vadd.xlane.f32.xlu1 %v518_v28  ;;  %612 = vadd.xlane.f32.xlu0 %v611_v49  ;;  %v234_v1 = vpop.xlane.xlu0 %233  ;;  %v614_v44 = vsel %vm87_vm0, %v456_v60, 0.0 }
  0xd1   :  { %v237_v24 = vpop.xlane.xlu1 %236  ;;  %v329_v56 = vmul.f32 0.03125, %v234_v1  ;;  %v425_v30 = vmul.f32 %v2904_v48, %v2904_v48 }
  0xd2   :  { %v330_v20 = vmul.f32 0.03125, %v237_v24  ;;  %v426_v3 = vmul.f32 %v2907_v61, %v2907_v61 }
  0xd3   :  { %v2916_v40 = vsub.f32 %v2500_v10, %v329_v56  ;;  %v521_v28 = vsel %vm87_vm0, %v425_v30, 0.0 }
  0xd4   :  { %v2919_v4 = vsub.f32 %v2505_v11, %v330_v20  ;;  %615 = vadd.xlane.f32.xlu1 %v614_v44  ;;  %522 = vadd.xlane.f32.xlu0 %v521_v28  ;;  %v144_v52 = vpop.xlane.xlu0 %143  ;;  %v524_v23 = vsel %vm87_vm0, %v426_v3, 0.0 }
  0xd5   :  { %v147_v38 = vpop.xlane.xlu1 %146  ;;  %v299_v60 = vmul.f32 0.03125, %v144_v52  ;;  %v457_v1 = vmul.f32 %v2916_v40, %v2916_v40 }
  0xd6   :  { %v300_v49 = vmul.f32 0.03125, %v147_v38  ;;  %v458_v10 = vmul.f32 %v2919_v4, %v2919_v4 }
  0xd7   :  { %v2928_v24 = vsub.f32 %v2514_v18, %v299_v60  ;;  %v617_v44 = vsel %vm87_vm0, %v457_v1, 0.0 }
  0xd8   :  { %v2931_v11 = vsub.f32 %v2519_v19, %v300_v49  ;;  %525 = vadd.xlane.f32.xlu1 %v524_v23  ;;  %618 = vadd.xlane.f32.xlu0 %v617_v44  ;;  %v240_v56 = vpop.xlane.xlu0 %239  ;;  %v620_v30 = vsel %vm87_vm0, %v458_v10, 0.0 }
  0xd9   :  { %v243_v20 = vpop.xlane.xlu1 %242  ;;  %v331_v3 = vmul.f32 0.03125, %v240_v56  ;;  %v427_v52 = vmul.f32 %v2928_v24, %v2928_v24 }
  0xda   :  { %v332_v28 = vmul.f32 0.03125, %v243_v20  ;;  %v428_v18 = vmul.f32 %v2931_v11, %v2931_v11 }
  0xdb   :  { %v2940_v38 = vsub.f32 %v2528_v26, %v331_v3  ;;  %v527_v23 = vsel %vm87_vm0, %v427_v52, 0.0 }
  0xdc   :  { %v2943_v19 = vsub.f32 %v2533_v27, %v332_v28  ;;  %621 = vadd.xlane.f32.xlu1 %v620_v30  ;;  %528 = vadd.xlane.f32.xlu0 %v527_v23  ;;  %v150_v60 = vpop.xlane.xlu0 %149  ;;  %v530_v1 = vsel %vm87_vm0, %v428_v18, 0.0 }
  0xdd   :  { %v153_v49 = vpop.xlane.xlu1 %152  ;;  %v301_v10 = vmul.f32 0.03125, %v150_v60  ;;  %v459_v56 = vmul.f32 %v2940_v38, %v2940_v38 }
  0xde   :  { %v302_v44 = vmul.f32 0.03125, %v153_v49  ;;  %v460_v26 = vmul.f32 %v2943_v19, %v2943_v19 }
  0xdf   :  { %v2952_v20 = vsub.f32 %v2542_v34, %v301_v10  ;;  %v623_v30 = vsel %vm87_vm0, %v459_v56, 0.0 }
  0xe0   :  { %v2955_v27 = vsub.f32 %v2547_v35, %v302_v44  ;;  %531 = vadd.xlane.f32.xlu1 %v530_v1  ;;  %624 = vadd.xlane.f32.xlu0 %v623_v30  ;;  %v246_v3 = vpop.xlane.xlu0 %245  ;;  %v626_v52 = vsel %vm87_vm0, %v460_v26, 0.0 }
  0xe1   :  { %v249_v28 = vpop.xlane.xlu1 %248  ;;  %v333_v18 = vmul.f32 0.03125, %v246_v3  ;;  %v429_v60 = vmul.f32 %v2952_v20, %v2952_v20 }
  0xe2   :  { %v334_v23 = vmul.f32 0.03125, %v249_v28  ;;  %v430_v34 = vmul.f32 %v2955_v27, %v2955_v27 }
  0xe3   :  { %v2964_v49 = vsub.f32 %v2556_v42, %v333_v18  ;;  %v533_v1 = vsel %vm87_vm0, %v429_v60, 0.0 }
  0xe4   :  { %v2967_v35 = vsub.f32 %v2561_v43, %v334_v23  ;;  %627 = vadd.xlane.f32.xlu1 %v626_v52  ;;  %534 = vadd.xlane.f32.xlu0 %v533_v1  ;;  %v156_v10 = vpop.xlane.xlu0 %155  ;;  %v536_v56 = vsel %vm87_vm0, %v430_v34, 0.0 }
  0xe5   :  { %v159_v44 = vpop.xlane.xlu1 %158  ;;  %v303_v26 = vmul.f32 0.03125, %v156_v10  ;;  %v461_v3 = vmul.f32 %v2964_v49, %v2964_v49 }
  0xe6   :  { %v304_v30 = vmul.f32 0.03125, %v159_v44  ;;  %v462_v42 = vmul.f32 %v2967_v35, %v2967_v35 }
  0xe7   :  { %v2976_v28 = vsub.f32 %v2570_v50, %v303_v26  ;;  %v629_v52 = vsel %vm87_vm0, %v461_v3, 0.0 }
  0xe8   :  { %v2979_v43 = vsub.f32 %v2575_v51, %v304_v30  ;;  %537 = vadd.xlane.f32.xlu1 %v536_v56  ;;  %630 = vadd.xlane.f32.xlu0 %v629_v52  ;;  %v252_v18 = vpop.xlane.xlu0 %251  ;;  %v632_v60 = vsel %vm87_vm0, %v462_v42, 0.0 }
  0xe9   :  { %v255_v23 = vpop.xlane.xlu1 %254  ;;  %v335_v34 = vmul.f32 0.03125, %v252_v18  ;;  %v431_v10 = vmul.f32 %v2976_v28, %v2976_v28 }
  0xea   :  { %3707 = vst [vmem:[#allocation17_spill] sm:$0xff] %v2979_v43  ;;  %v336_v1 = vmul.f32 0.03125, %v255_v23  ;;  %v432_v50 = vmul.f32 %v2979_v43, %v2979_v43 }
  0xeb   :  { %v2988_v44 = vsub.f32 %v2584_v58, %v335_v34  ;;  %v539_v56 = vsel %vm87_vm0, %v431_v10, 0.0 }
  0xec   :  { %v2991_v51 = vsub.f32 %v2589_v59, %v336_v1  ;;  %633 = vadd.xlane.f32.xlu1 %v632_v60  ;;  %540 = vadd.xlane.f32.xlu0 %v539_v56  ;;  %v162_v26 = vpop.xlane.xlu0 %161  ;;  %v542_v3 = vsel %vm87_vm0, %v432_v50, 0.0 }
  0xed   :  { %3708 = vst [vmem:[#allocation18_spill] sm:$0xff] %v2988_v44  ;;  %v165_v30 = vpop.xlane.xlu1 %164  ;;  %v305_v42 = vmul.f32 0.03125, %v162_v26  ;;  %v463_v18 = vmul.f32 %v2988_v44, %v2988_v44 }
  0xee   :  { %3709 = vst [vmem:[#allocation19_spill] sm:$0xff] %v2991_v51  ;;  %v306_v52 = vmul.f32 0.03125, %v165_v30  ;;  %v464_v58 = vmul.f32 %v2991_v51, %v2991_v51  ;;  %v3712_v30 = vld [vmem:[#allocation2_spill] sm:$0xff] }
  0xef   :  { %v3000_v23 = vsub.f32 %v2598_v6, %v305_v42  ;;  %v635_v60 = vsel %vm87_vm0, %v463_v18, 0.0 }
  0xf0   :  { %v3003_v59 = vsub.f32 %v2603_v7, %v306_v52  ;;  %543 = vadd.xlane.f32.xlu1 %v542_v3  ;;  %636 = vadd.xlane.f32.xlu0 %v635_v60  ;;  %v258_v34 = vpop.xlane.xlu0 %257  ;;  %v638_v10 = vsel %vm87_vm0, %v464_v58, 0.0  ;;  %v3714_v7 = vld [vmem:[#allocation3_spill] sm:$0xff] }
  0xf1   :  { %3710 = vst [vmem:[#allocation20_spill] sm:$0xff] %v3000_v23  ;;  %v261_v1 = vpop.xlane.xlu1 %260  ;;  %v337_v50 = vmul.f32 0.03125, %v258_v34  ;;  %v433_v26 = vmul.f32 %v3000_v23, %v3000_v23 }
  0xf2   :  { %3711 = vst [vmem:[#allocation21_spill] sm:$0xff] %v3003_v59  ;;  %v338_v56 = vmul.f32 0.03125, %v261_v1  ;;  %v434_v6 = vmul.f32 %v3003_v59, %v3003_v59 }
  0xf3   :  { %v3012_v42 = vsub.f32 %v3712_v30, %v337_v50  ;;  %v545_v3 = vsel %vm87_vm0, %v433_v26, 0.0  ;;  %v3716_v30 = vld [vmem:[#allocation4_spill] sm:$0xff] }
  0xf4   :  { %v3015_v52 = vsub.f32 %v3714_v7, %v338_v56  ;;  %639 = vadd.xlane.f32.xlu1 %v638_v10  ;;  %546 = vadd.xlane.f32.xlu0 %v545_v3  ;;  %v168_v18 = vpop.xlane.xlu0 %167  ;;  %v548_v60 = vsel %vm87_vm0, %v434_v6, 0.0  ;;  %v3718_v56 = vld [vmem:[#allocation5_spill] sm:$0xff] }
  0xf5   :  { %3713 = vst [vmem:[#allocation2_spill] sm:$0xff] %v3012_v42  ;;  %v171_v58 = vpop.xlane.xlu1 %170  ;;  %v307_v34 = vmul.f32 0.03125, %v168_v18  ;;  %v465_v23 = vmul.f32 %v3012_v42, %v3012_v42 }
  0xf6   :  { %3715 = vst [vmem:[#allocation3_spill] sm:$0xff] %v3015_v52  ;;  %v308_v1 = vmul.f32 0.03125, %v171_v58  ;;  %v466_v50 = vmul.f32 %v3015_v52, %v3015_v52 }
  0xf7   :  { %v3024_v59 = vsub.f32 %v3716_v30, %v307_v34  ;;  %v641_v10 = vsel %vm87_vm0, %v465_v23, 0.0  ;;  %v3720_v30 = vld [vmem:[#allocation6_spill] sm:$0xff] }
  0xf8   :  { %v3027_v7 = vsub.f32 %v3718_v56, %v308_v1  ;;  %549 = vadd.xlane.f32.xlu1 %v548_v60  ;;  %642 = vadd.xlane.f32.xlu0 %v641_v10  ;;  %v264_v26 = vpop.xlane.xlu0 %263  ;;  %v644_v3 = vsel %vm87_vm0, %v466_v50, 0.0  ;;  %v3722_v1 = vld [vmem:[#allocation7_spill] sm:$0xff] }
  0xf9   :  { %3717 = vst [vmem:[#allocation4_spill] sm:$0xff] %v3024_v59  ;;  %v267_v6 = vpop.xlane.xlu1 %266  ;;  %v339_v18 = vmul.f32 0.03125, %v264_v26  ;;  %v435_v42 = vmul.f32 %v3024_v59, %v3024_v59 }
  0xfa   :  { %3719 = vst [vmem:[#allocation5_spill] sm:$0xff] %v3027_v7  ;;  %v340_v58 = vmul.f32 0.03125, %v267_v6  ;;  %v436_v34 = vmul.f32 %v3027_v7, %v3027_v7 }
  0xfb   :  { %v3036_v52 = vsub.f32 %v3720_v30, %v339_v18  ;;  %v551_v23 = vsel %vm87_vm0, %v435_v42, 0.0  ;;  %v3724_v30 = vld [vmem:[#allocation8_spill] sm:$0xff] }
  0xfc   :  { %v3039_v56 = vsub.f32 %v3722_v1, %v340_v58  ;;  %645 = vadd.xlane.f32.xlu1 %v644_v3  ;;  %552 = vadd.xlane.f32.xlu0 %v551_v23  ;;  %v174_v60 = vpop.xlane.xlu0 %173  ;;  %v554_v10 = vsel %vm87_vm0, %v436_v34, 0.0  ;;  %v3726_v58 = vld [vmem:[#allocation9_spill] sm:$0xff] }
  0xfd   :  { %3721 = vst [vmem:[#allocation6_spill] sm:$0xff] %v3036_v52  ;;  %v177_v50 = vpop.xlane.xlu1 %176  ;;  %v309_v26 = vmul.f32 0.03125, %v174_v60  ;;  %v467_v59 = vmul.f32 %v3036_v52, %v3036_v52 }
  0xfe   :  { %3723 = vst [vmem:[#allocation7_spill] sm:$0xff] %v3039_v56  ;;  %v310_v6 = vmul.f32 0.03125, %v177_v50  ;;  %v468_v18 = vmul.f32 %v3039_v56, %v3039_v56 }
  0xff   :  { %v3048_v7 = vsub.f32 %v3724_v30, %v309_v26  ;;  %v647_v42 = vsel %vm87_vm0, %v467_v59, 0.0  ;;  %v3728_v30 = vld [vmem:[#allocation10_spill] sm:$0xff] }
 0x100   :  { %v3051_v1 = vsub.f32 %v3726_v58, %v310_v6  ;;  %555 = vadd.xlane.f32.xlu1 %v554_v10  ;;  %648 = vadd.xlane.f32.xlu0 %v647_v42  ;;  %v270_v3 = vpop.xlane.xlu0 %269  ;;  %v650_v23 = vsel %vm87_vm0, %v468_v18, 0.0  ;;  %v3730_v6 = vld [vmem:[#allocation11_spill] sm:$0xff] }
 0x101   :  { %3725 = vst [vmem:[#allocation8_spill] sm:$0xff] %v3048_v7  ;;  %v273_v34 = vpop.xlane.xlu1 %272  ;;  %v341_v60 = vmul.f32 0.03125, %v270_v3  ;;  %v437_v52 = vmul.f32 %v3048_v7, %v3048_v7 }
 0x102   :  { %3727 = vst [vmem:[#allocation9_spill] sm:$0xff] %v3051_v1  ;;  %v342_v50 = vmul.f32 0.03125, %v273_v34  ;;  %v438_v26 = vmul.f32 %v3051_v1, %v3051_v1 }
 0x103   :  { %v3060_v56 = vsub.f32 %v3728_v30, %v341_v60  ;;  %v557_v59 = vsel %vm87_vm0, %v437_v52, 0.0  ;;  %v3732_v30 = vld [vmem:[#allocation12_spill] sm:$0xff] }
 0x104   :  { %v3063_v58 = vsub.f32 %v3730_v6, %v342_v50  ;;  %651 = vadd.xlane.f32.xlu1 %v650_v23  ;;  %558 = vadd.xlane.f32.xlu0 %v557_v59  ;;  %v180_v10 = vpop.xlane.xlu0 %179  ;;  %v560_v42 = vsel %vm87_vm0, %v438_v26, 0.0  ;;  %v3734_v50 = vld [vmem:[#allocation13_spill] sm:$0xff] }
 0x105   :  { %3729 = vst [vmem:[#allocation10_spill] sm:$0xff] %v3060_v56  ;;  %v183_v18 = vpop.xlane.xlu1 %182  ;;  %v311_v3 = vmul.f32 0.03125, %v180_v10  ;;  %v469_v7 = vmul.f32 %v3060_v56, %v3060_v56 }
 0x106   :  { %3731 = vst [vmem:[#allocation11_spill] sm:$0xff] %v3063_v58  ;;  %v312_v34 = vmul.f32 0.03125, %v183_v18  ;;  %v470_v60 = vmul.f32 %v3063_v58, %v3063_v58 }
 0x107   :  { %v3072_v1 = vsub.f32 %v3732_v30, %v311_v3  ;;  %v653_v52 = vsel %vm87_vm0, %v469_v7, 0.0  ;;  %v3736_v30 = vld [vmem:[#allocation14_spill] sm:$0xff] }
 0x108   :  { %v3075_v6 = vsub.f32 %v3734_v50, %v312_v34  ;;  %561 = vadd.xlane.f32.xlu1 %v560_v42  ;;  %654 = vadd.xlane.f32.xlu0 %v653_v52  ;;  %v276_v23 = vpop.xlane.xlu0 %275  ;;  %v656_v59 = vsel %vm87_vm0, %v470_v60, 0.0 }
 0x109   :  { %3733 = vst [vmem:[#allocation12_spill] sm:$0xff] %v3072_v1  ;;  %v279_v26 = vpop.xlane.xlu1 %278  ;;  %v343_v10 = vmul.f32 0.03125, %v276_v23  ;;  %v439_v56 = vmul.f32 %v3072_v1, %v3072_v1 }
 0x10a   :  { %3735 = vst [vmem:[#allocation13_spill] sm:$0xff] %v3075_v6  ;;  %v344_v18 = vmul.f32 0.03125, %v279_v26  ;;  %v440_v3 = vmul.f32 %v3075_v6, %v3075_v6 }
 0x10b   :  { %v3084_v58 = vsub.f32 %v3736_v30, %v343_v10  ;;  %v563_v7 = vsel %vm87_vm0, %v439_v56, 0.0 }
 0x10c   :  { %v3087_v34 = vsub.f32 %v2701_v46, %v344_v18  ;;  %657 = vadd.xlane.f32.xlu1 %v656_v59  ;;  %564 = vadd.xlane.f32.xlu0 %v563_v7  ;;  %v566_v42 = vsel %vm87_vm0, %v440_v3, 0.0 }
 0x10d   :  { %3737 = vst [vmem:[#allocation14_spill] sm:$0xff] %v3084_v58  ;;  %v471_v60 = vmul.f32 %v3084_v58, %v3084_v58 }
 0x10e   :  { %3738 = vst [vmem:[#allocation22_spill] sm:$0xff] %v3087_v34  ;;  %v472_v50 = vmul.f32 %v3087_v34, %v3087_v34 }
 0x10f   :  { %v659_v52 = vsel %vm87_vm0, %v471_v60, 0.0 }
 0x110   :  { %567 = vadd.xlane.f32.xlu1 %v566_v42  ;;  %660 = vadd.xlane.f32.xlu0 %v659_v52  ;;  %v662_v23 = vsel %vm87_vm0, %v472_v50, 0.0 }
 0x114   :  { %663 = vadd.xlane.f32.xlu1 %v662_v23 }
 0x11d   :  { %v475_v46 = vpop.xlane.xlu0 %474 }
 0x11e   :  { %v665_v26 = vmul.f32 0.03125, %v475_v46 }
 0x120   :  { %v729_v56 = vadd.f32 1e-05, %v665_v26 }
 0x121   :  { %v478_v59 = vpop.xlane.xlu1 %477  ;;  %v571_v10 = vpop.xlane.xlu0 %570 }
 0x122   :  { %2099 = vrsqrt.f32 %v729_v56  ;;  %v666_v18 = vmul.f32 0.03125, %v478_v59  ;;  %v697_v3 = vmul.f32 0.03125, %v571_v10 }
 0x124   :  { %v730_v30 = vadd.f32 1e-05, %v666_v18  ;;  %v761_v7 = vadd.f32 1e-05, %v697_v3 }
 0x125   :  { %v574_v58 = vpop.xlane.xlu1 %573  ;;  %v481_v6 = vpop.xlane.xlu0 %480 }
 0x126   :  { %2101 = vrsqrt.f32 %v730_v30  ;;  %v698_v34 = vmul.f32 0.03125, %v574_v58  ;;  %v667_v60 = vmul.f32 0.03125, %v481_v6 }
 0x127   :  { %2103 = vrsqrt.f32 %v761_v7 }
 0x128   :  { %v762_v42 = vadd.f32 1e-05, %v698_v34  ;;  %v731_v52 = vadd.f32 1e-05, %v667_v60  ;;  %v3100_v34 = vld [vmem:[%s3654_s1] ss:$0 sm:$0xff] }
 0x129   :  { %v484_v50 = vpop.xlane.xlu1 %483  ;;  %v577_v23 = vpop.xlane.xlu0 %576 }
 0x12a   :  { %2105 = vrsqrt.f32 %v762_v42  ;;  %v668_v46 = vmul.f32 0.03125, %v484_v50  ;;  %v699_v26 = vmul.f32 0.03125, %v577_v23 }
 0x12b   :  { %2107 = vrsqrt.f32 %v731_v52 }
 0x12c   :  { %v732_v1 = vadd.f32 1e-05, %v668_v46  ;;  %v763_v56 = vadd.f32 1e-05, %v699_v26 }
 0x12d   :  { %v580_v59 = vpop.xlane.xlu1 %579  ;;  %v487_v10 = vpop.xlane.xlu0 %486 }
 0x12e   :  { %2109 = vrsqrt.f32 %v732_v1  ;;  %v700_v18 = vmul.f32 0.03125, %v580_v59  ;;  %v669_v3 = vmul.f32 0.03125, %v487_v10  ;;  %v3739_v10 = vld [vmem:[#allocation15_spill] sm:$0xff] }
 0x12f   :  { %v2100_v51 = vpop.eup %2099  ;;  %2111 = vrsqrt.f32 %v763_v56  ;;  %v3107_v56 = vld [vmem:[%s3655_s2] ss:$0 sm:$0xff] }
 0x130   :  { %v764_v58 = vadd.f32 1e-05, %v700_v18  ;;  %v733_v6 = vadd.f32 1e-05, %v669_v3  ;;  %v857_v30 = vmul.f32 %v2100_v51, %v2708_v39 }
 0x131   :  { %v490_v7 = vpop.xlane.xlu1 %489  ;;  %v583_v60 = vpop.xlane.xlu0 %582 }
 0x132   :  { %2113 = vrsqrt.f32 %v764_v58  ;;  %v670_v42 = vmul.f32 0.03125, %v490_v7  ;;  %v701_v52 = vmul.f32 0.03125, %v583_v60  ;;  %v927_v1 = vmul.f32 %v3100_v34, %v857_v30 }
 0x133   :  { %v2102_v50 = vpop.eup %2101  ;;  %2115 = vrsqrt.f32 %v733_v6 }
 0x134   :  { %v2104_v23 = vpop.eup %2103  ;;  %v734_v46 = vadd.f32 1e-05, %v670_v42  ;;  %v765_v26 = vadd.f32 1e-05, %v701_v52  ;;  %v858_v59 = vmul.f32 %v2102_v50, %v2718_v63  ;;  %v997_v7 = vadd.f32 %v3107_v56, %v927_v1 }
 0x135   :  { %v586_v39 = vpop.xlane.xlu1 %585  ;;  %v493_v51 = vpop.xlane.xlu0 %492  ;;  %v889_v18 = vmul.f32 %v2104_v23, %v3739_v10 }
 0x136   :  { %2117 = vrsqrt.f32 %v734_v46  ;;  %v702_v3 = vmul.f32 0.03125, %v586_v39  ;;  %v671_v58 = vmul.f32 0.03125, %v493_v51  ;;  %v928_v6 = vmul.f32 %v3100_v34, %v858_v59 }
 0x137   :  { %v2106_v30 = vpop.eup %2105  ;;  %2119 = vrsqrt.f32 %v765_v26  ;;  %v959_v23 = vmul.f32 %v3100_v34, %v889_v18 }
 0x138   :  { %v2108_v60 = vpop.eup %2107  ;;  %v766_v42 = vadd.f32 1e-05, %v702_v3  ;;  %v735_v52 = vadd.f32 1e-05, %v671_v58  ;;  %v998_v44 = vadd.f32 %v3107_v56, %v928_v6  ;;  %v890_v63 = vmul.f32 %v2106_v30, %v2721_v14 }
 0x139   :  { %v496_v50 = vpop.xlane.xlu1 %495  ;;  %v589_v43 = vpop.xlane.xlu0 %588  ;;  %v859_v46 = vmul.f32 %v2108_v60, %v2730_v2  ;;  %v1029_v2 = vadd.f32 %v3107_v56, %v959_v23 }
 0x13a   :  { %2121 = vrsqrt.f32 %v766_v42  ;;  %v672_v39 = vmul.f32 0.03125, %v496_v50  ;;  %v703_v59 = vmul.f32 0.03125, %v589_v43  ;;  %v1061_v51 = vpack.c.bf16 %v998_v44, %v997_v7 }
 0x13b   :  { %v2110_v26 = vpop.eup %2109  ;;  %2123 = vrsqrt.f32 %v735_v52  ;;  %v960_v1 = vmul.f32 %v3100_v34, %v890_v63  ;;  %v929_v10 = vmul.f32 %v3100_v34, %v859_v46 }
 0x13c   :  { %v2112_v3 = vpop.eup %2111  ;;  %v736_v58 = vadd.f32 1e-05, %v672_v39  ;;  %v767_v6 = vadd.f32 1e-05, %v703_v59  ;;  %2029 = vmatprep.mubr.msk.bf16.mxu0 %vm87_vm0, %v1061_v51  ;;  %v860_v14 = vmul.f32 %v2110_v26, %v2733_v5 }
 0x13d   :  { %v592_v18 = vpop.xlane.xlu1 %591  ;;  %v499_v30 = vpop.xlane.xlu0 %498  ;;  %v1030_v43 = vadd.f32 %v3107_v56, %v960_v1  ;;  %v891_v44 = vmul.f32 %v2112_v3, %v2742_v15  ;;  %v999_v50 = vadd.f32 %v3107_v56, %v929_v10 }
 0x13e   :  { %2125 = vrsqrt.f32 %v736_v58  ;;  %v704_v7 = vmul.f32 0.03125, %v592_v18  ;;  %v673_v60 = vmul.f32 0.03125, %v499_v30  ;;  %v930_v42 = vmul.f32 %v3100_v34, %v860_v14 }
 0x13f   :  { %v2114_v52 = vpop.eup %2113  ;;  %2127 = vrsqrt.f32 %v767_v6  ;;  %v1077_v63 = vpack.c.bf16 %v1030_v43, %v1029_v2  ;;  %v961_v26 = vmul.f32 %v3100_v34, %v891_v44 }
 0x140   :  { %v2116_v46 = vpop.eup %2115  ;;  %v768_v5 = vadd.f32 1e-05, %v704_v7  ;;  %v737_v39 = vadd.f32 1e-05, %v673_v60  ;;  %v1000_v59 = vadd.f32 %v3107_v56, %v930_v42  ;;  %v892_v23 = vmul.f32 %v2114_v52, %v2745_v9 }
 0x141   :  { %2061 = vmatprep.mubr.msk.bf16.mxu1 %vm87_vm0, %v1077_v63  ;;  %v502_v15 = vpop.xlane.xlu1 %501  ;;  %v595_v51 = vpop.xlane.xlu0 %594  ;;  %v861_v1 = vmul.f32 %v2116_v46, %v2754_v0  ;;  %v1031_v0 = vadd.f32 %v3107_v56, %v961_v26 }
 0x142   :  { %2129 = vrsqrt.f32 %v768_v5  ;;  %v674_v3 = vmul.f32 0.03125, %v502_v15  ;;  %v705_v58 = vmul.f32 0.03125, %v595_v51  ;;  %v1062_v6 = vpack.c.bf16 %v1000_v59, %v999_v50 }
 0x143   :  { %v2118_v10 = vpop.eup %2117  ;;  %2131 = vrsqrt.f32 %v737_v39  ;;  %v962_v14 = vmul.f32 %v3100_v34, %v892_v23  ;;  %v931_v18 = vmul.f32 %v3100_v34, %v861_v1 }
 0x144   :  { %v2120_v30 = vpop.eup %2119  ;;  %v738_v9 = vadd.f32 1e-05, %v674_v3  ;;  %v769_v2 = vadd.f32 1e-05, %v705_v58  ;;  %2030 = vmatmul.mubr.msk.bf16.vlgmr.msra.gmra.mxu0 %vm87_vm0, %v1062_v6  ;;  %v862_v43 = vmul.f32 %v2118_v10, %v2757_v13 }
 0x145   :  { %v598_v44 = vpop.xlane.xlu1 %597  ;;  %v505_v7 = vpop.xlane.xlu0 %504  ;;  %v1032_v60 = vadd.f32 %v3107_v56, %v962_v14  ;;  %v893_v42 = vmul.f32 %v2120_v30, %v2766_v22  ;;  %v1001_v39 = vadd.f32 %v3107_v56, %v931_v18 }
 0x146   :  { %2133 = vrsqrt.f32 %v738_v9  ;;  %v706_v52 = vmul.f32 0.03125, %v598_v44  ;;  %v675_v63 = vmul.f32 0.03125, %v505_v7  ;;  %v932_v50 = vmul.f32 %v3100_v34, %v862_v43 }
 0x147   :  { %v2122_v46 = vpop.eup %2121  ;;  %2135 = vrsqrt.f32 %v769_v2  ;;  %v1078_v5 = vpack.c.bf16 %v1032_v60, %v1031_v0  ;;  %v963_v1 = vmul.f32 %v3100_v34, %v893_v42 }
 0x148   :  { %v2124_v59 = vpop.eup %2123  ;;  %v770_v13 = vadd.f32 1e-05, %v706_v52  ;;  %v739_v23 = vadd.f32 1e-05, %v675_v63  ;;  %v1002_v15 = vadd.f32 %v3107_v56, %v932_v50  ;;  %v894_v51 = vmul.f32 %v2122_v46, %v2769_v17 }
 0x149   :  { %2062 = vmatmul.mubr.msk.bf16.vlgmr.msra.gmra.mxu1 %vm87_vm0, %v1078_v5  ;;  %v508_v22 = vpop.xlane.xlu1 %507  ;;  %v601_v26 = vpop.xlane.xlu0 %600  ;;  %v863_v3 = vmul.f32 %v2124_v59, %v2778_v55  ;;  %v1033_v55 = vadd.f32 %v3107_v56, %v963_v1 }
 0x14a   :  { %2137 = vrsqrt.f32 %v770_v13  ;;  %v676_v58 = vmul.f32 0.03125, %v508_v22  ;;  %v707_v6 = vmul.f32 0.03125, %v601_v26  ;;  %v1063_v10 = vpack.c.bf16 %v1002_v15, %v1001_v39 }
 0x14b   :  { %v2126_v14 = vpop.eup %2125  ;;  %2139 = vrsqrt.f32 %v739_v23  ;;  %v964_v18 = vmul.f32 %v3100_v34, %v894_v51  ;;  %v933_v30 = vmul.f32 %v3100_v34, %v863_v3 }
 0x14c   :  { %v2128_v9 = vpop.eup %2127  ;;  %v740_v17 = vadd.f32 1e-05, %v676_v58  ;;  %v771_v2 = vadd.f32 1e-05, %v707_v6  ;;  %2033 = vmatprep.mubr.msk.bf16.mxu0 %vm87_vm0, %v1063_v10  ;;  %v864_v43 = vmul.f32 %v2126_v14, %v2781_v21 }
 0x14d   :  { %v604_v44 = vpop.xlane.xlu1 %603  ;;  %v511_v7 = vpop.xlane.xlu0 %510  ;;  %v1034_v0 = vadd.f32 %v3107_v56, %v964_v18  ;;  %v895_v60 = vmul.f32 %v2128_v9, %v2790_v62  ;;  %v1003_v5 = vadd.f32 %v3107_v56, %v933_v30 }
 0x14e   :  { %2141 = vrsqrt.f32 %v740_v17  ;;  %v708_v42 = vmul.f32 0.03125, %v604_v44  ;;  %v677_v52 = vmul.f32 0.03125, %v511_v7  ;;  %v934_v63 = vmul.f32 %v3100_v34, %v864_v43 }
 0x14f   :  { %v2130_v50 = vpop.eup %2129  ;;  %2143 = vrsqrt.f32 %v771_v2  ;;  %v1079_v46 = vpack.c.bf16 %v1034_v0, %v1033_v55  ;;  %v965_v51 = vmul.f32 %v3100_v34, %v895_v60 }
 0x150   :  { %v2132_v39 = vpop.eup %2131  ;;  %v772_v21 = vadd.f32 1e-05, %v708_v42  ;;  %v741_v59 = vadd.f32 1e-05, %v677_v52  ;;  %v1004_v13 = vadd.f32 %v3107_v56, %v934_v63  ;;  %v896_v23 = vmul.f32 %v2130_v50, %v2793_v25 }
 0x151   :  { %2065 = vmatprep.mubr.msk.bf16.mxu1 %vm87_vm0, %v1079_v46  ;;  %v514_v62 = vpop.xlane.xlu1 %513  ;;  %v607_v15 = vpop.xlane.xlu0 %606  ;;  %v865_v22 = vmul.f32 %v2132_v39, %v2802_v31  ;;  %v1035_v31 = vadd.f32 %v3107_v56, %v965_v51 }
 0x152   :  { %2145 = vrsqrt.f32 %v772_v21  ;;  %v678_v26 = vmul.f32 0.03125, %v514_v62  ;;  %v709_v1 = vmul.f32 0.03125, %v607_v15  ;;  %v1064_v3 = vpack.c.bf16 %v1004_v13, %v1003_v5 }
 0x153   :  { %v2134_v58 = vpop.eup %2133  ;;  %2147 = vrsqrt.f32 %v741_v59  ;;  %v966_v6 = vmul.f32 %v3100_v34, %v896_v23  ;;  %v935_v10 = vmul.f32 %v3100_v34, %v865_v22 }
 0x154   :  { %v2136_v14 = vpop.eup %2135  ;;  %v742_v25 = vadd.f32 1e-05, %v678_v26  ;;  %v773_v18 = vadd.f32 1e-05, %v709_v1  ;;  %2034 = vmatmul.mubr.msk.bf16.gmra.mxu0 %vm87_vm0, %v1064_v3  ;;  %v866_v30 = vmul.f32 %v2134_v58, %v2805_v29 }
 0x155   :  { %v610_v9 = vpop.xlane.xlu1 %609  ;;  %v517_v17 = vpop.xlane.xlu0 %516  ;;  %v1036_v2 = vadd.f32 %v3107_v56, %v966_v6  ;;  %v897_v43 = vmul.f32 %v2136_v14, %v2814_v8  ;;  %v1005_v42 = vadd.f32 %v3107_v56, %v935_v10 }
 0x156   :  { %2149 = vrsqrt.f32 %v742_v25  ;;  %v710_v44 = vmul.f32 0.03125, %v610_v9  ;;  %v679_v7 = vmul.f32 0.03125, %v517_v17  ;;  %v936_v55 = vmul.f32 %v3100_v34, %v866_v30 }
 0x157   :  { %v2138_v0 = vpop.eup %2137  ;;  %2151 = vrsqrt.f32 %v773_v18  ;;  %v1080_v60 = vpack.c.bf16 %v1036_v2, %v1035_v31  ;;  %v967_v39 = vmul.f32 %v3100_v34, %v897_v43 }
 0x158   :  { %v2140_v52 = vpop.eup %2139  ;;  %v774_v29 = vadd.f32 1e-05, %v710_v44  ;;  %v743_v63 = vadd.f32 1e-05, %v679_v7  ;;  %v1006_v50 = vadd.f32 %v3107_v56, %v936_v55  ;;  %v898_v46 = vmul.f32 %v2138_v0, %v2817_v33 }
 0x159   :  { %2066 = vmatmul.mubr.msk.bf16.gmra.mxu1 %vm87_vm0, %v1080_v60  ;;  %v520_v8 = vpop.xlane.xlu1 %519  ;;  %v613_v5 = vpop.xlane.xlu0 %612  ;;  %v867_v21 = vmul.f32 %v2140_v52, %v2826_v12  ;;  %v1037_v12 = vadd.f32 %v3107_v56, %v967_v39 }
 0x15a   :  { %2153 = vrsqrt.f32 %v774_v29  ;;  %v680_v59 = vmul.f32 0.03125, %v520_v8  ;;  %v711_v13 = vmul.f32 0.03125, %v613_v5  ;;  %v1065_v23 = vpack.c.bf16 %v1006_v50, %v1005_v42  ;;  %v3740_v5 = vld [vmem:[#allocation16_spill] sm:$0xff] }
 0x15b   :  { %v2142_v62 = vpop.eup %2141  ;;  %2155 = vrsqrt.f32 %v743_v63  ;;  %v968_v15 = vmul.f32 %v3100_v34, %v898_v46  ;;  %v937_v51 = vmul.f32 %v3100_v34, %v867_v21 }
 0x15c   :  { %v2144_v22 = vpop.eup %2143  ;;  %v744_v33 = vadd.f32 1e-05, %v680_v59  ;;  %v775_v26 = vadd.f32 1e-05, %v711_v13  ;;  %2037 = vmatprep.mubr.msk.bf16.mxu0 %vm87_vm0, %v1065_v23  ;;  %v868_v1 = vmul.f32 %v2142_v62, %v2829_v37 }
 0x15d   :  { %v616_v3 = vpop.xlane.xlu1 %615  ;;  %v523_v58 = vpop.xlane.xlu0 %522  ;;  %v1038_v6 = vadd.f32 %v3107_v56, %v968_v15  ;;  %v899_v10 = vmul.f32 %v2144_v22, %v2838_v16  ;;  %v1007_v17 = vadd.f32 %v3107_v56, %v937_v51 }
 0x15e   :  { %2157 = vrsqrt.f32 %v744_v33  ;;  %v712_v14 = vmul.f32 0.03125, %v616_v3  ;;  %v681_v25 = vmul.f32 0.03125, %v523_v58  ;;  %v938_v18 = vmul.f32 %v3100_v34, %v868_v1 }
 0x15f   :  { %v2146_v30 = vpop.eup %2145  ;;  %2159 = vrsqrt.f32 %v775_v26  ;;  %v1081_v9 = vpack.c.bf16 %v1038_v6, %v1037_v12  ;;  %v969_v55 = vmul.f32 %v3100_v34, %v899_v10 }
 0x160   :  { %v2148_v31 = vpop.eup %2147  ;;  %v776_v37 = vadd.f32 1e-05, %v712_v14  ;;  %v745_v2 = vadd.f32 1e-05, %v681_v25  ;;  %v1008_v43 = vadd.f32 %v3107_v56, %v938_v18  ;;  %v900_v44 = vmul.f32 %v2146_v30, %v2841_v41 }
 0x161   :  { %2069 = vmatprep.mubr.msk.bf16.mxu1 %vm87_vm0, %v1081_v9  ;;  %v526_v16 = vpop.xlane.xlu1 %525  ;;  %v619_v7 = vpop.xlane.xlu0 %618  ;;  %v869_v0 = vmul.f32 %v2148_v31, %v2853_v32  ;;  %v1039_v32 = vadd.f32 %v3107_v56, %v969_v55 }
 0x162   :  { %2161 = vrsqrt.f32 %v776_v37  ;;  %v682_v60 = vmul.f32 0.03125, %v526_v16  ;;  %v713_v42 = vmul.f32 0.03125, %v619_v7  ;;  %v1066_v52 = vpack.c.bf16 %v1008_v43, %v1007_v17 }
 0x163   :  { %v2150_v29 = vpop.eup %2149  ;;  %2163 = vrsqrt.f32 %v745_v2  ;;  %v970_v63 = vmul.f32 %v3100_v34, %v900_v44  ;;  %v939_v50 = vmul.f32 %v3100_v34, %v869_v0 }
 0x164   :  { %v2152_v46 = vpop.eup %2151  ;;  %v746_v41 = vadd.f32 1e-05, %v682_v60  ;;  %v777_v8 = vadd.f32 1e-05, %v713_v42  ;;  %2038 = vmatmul.mubr.msk.bf16.gmra.mxu0 %vm87_vm0, %v1066_v52  ;;  %v870_v39 = vmul.f32 %v2150_v29, %v3740_v5 }
 0x165   :  { %v622_v21 = vpop.xlane.xlu1 %621  ;;  %v529_v59 = vpop.xlane.xlu0 %528  ;;  %v1040_v13 = vadd.f32 %v3107_v56, %v970_v63  ;;  %v901_v23 = vmul.f32 %v2152_v46, %v2868_v54  ;;  %v1009_v26 = vadd.f32 %v3107_v56, %v939_v50 }
 0x166   :  { %2165 = vrsqrt.f32 %v746_v41  ;;  %v714_v62 = vmul.f32 0.03125, %v622_v21  ;;  %v683_v15 = vmul.f32 0.03125, %v529_v59  ;;  %v940_v51 = vmul.f32 %v3100_v34, %v870_v39 }
 0x167   :  { %v2154_v22 = vpop.eup %2153  ;;  %2167 = vrsqrt.f32 %v777_v8  ;;  %v1082_v33 = vpack.c.bf16 %v1040_v13, %v1039_v32  ;;  %v971_v14 = vmul.f32 %v3100_v34, %v901_v23 }
 0x168   :  { %v2156_v1 = vpop.eup %2155  ;;  %v778_v3 = vadd.f32 1e-05, %v714_v62  ;;  %v747_v58 = vadd.f32 1e-05, %v683_v15  ;;  %v1010_v12 = vadd.f32 %v3107_v56, %v940_v51  ;;  %v902_v6 = vmul.f32 %v2154_v22, %v2871_v36 }
 0x169   :  { %2070 = vmatmul.mubr.msk.bf16.gmra.mxu1 %vm87_vm0, %v1082_v33  ;;  %v532_v54 = vpop.xlane.xlu1 %531  ;;  %v625_v10 = vpop.xlane.xlu0 %624  ;;  %v871_v25 = vmul.f32 %v2156_v1, %v2880_v53  ;;  %v1041_v53 = vadd.f32 %v3107_v56, %v971_v14 }
 0x16a   :  { %2169 = vrsqrt.f32 %v778_v3  ;;  %v684_v18 = vmul.f32 0.03125, %v532_v54  ;;  %v715_v30 = vmul.f32 0.03125, %v625_v10  ;;  %v1067_v9 = vpack.c.bf16 %v1010_v12, %v1009_v26 }
 0x16b   :  { %v2158_v17 = vpop.eup %2157  ;;  %2171 = vrsqrt.f32 %v747_v58  ;;  %v972_v31 = vmul.f32 %v3100_v34, %v902_v6  ;;  %v941_v37 = vmul.f32 %v3100_v34, %v871_v25 }
 0x16c   :  { %v2160_v2 = vpop.eup %2159  ;;  %v748_v36 = vadd.f32 1e-05, %v684_v18  ;;  %v779_v43 = vadd.f32 1e-05, %v715_v30  ;;  %2041 = vmatprep.mubr.msk.bf16.mxu0 %vm87_vm0, %v1067_v9  ;;  %v872_v44 = vmul.f32 %v2158_v17, %v2883_v47 }
 0x16d   :  { %v628_v16 = vpop.xlane.xlu1 %627  ;;  %v535_v7 = vpop.xlane.xlu0 %534  ;;  %v1042_v55 = vadd.f32 %v3107_v56, %v972_v31  ;;  %v903_v0 = vmul.f32 %v2160_v2, %v2892_v45  ;;  %v1011_v50 = vadd.f32 %v3107_v56, %v941_v37 }
 0x16e   :  { %2173 = vrsqrt.f32 %v748_v36  ;;  %v716_v60 = vmul.f32 0.03125, %v628_v16  ;;  %v685_v42 = vmul.f32 0.03125, %v535_v7  ;;  %v942_v52 = vmul.f32 %v3100_v34, %v872_v44 }
 0x16f   :  { %v2162_v29 = vpop.eup %2161  ;;  %2175 = vrsqrt.f32 %v779_v43  ;;  %v1083_v63 = vpack.c.bf16 %v1042_v55, %v1041_v53  ;;  %v973_v21 = vmul.f32 %v3100_v34, %v903_v0 }
 0x170   :  { %v2164_v46 = vpop.eup %2163  ;;  %v780_v47 = vadd.f32 1e-05, %v716_v60  ;;  %v749_v41 = vadd.f32 1e-05, %v685_v42  ;;  %v1012_v8 = vadd.f32 %v3107_v56, %v942_v52  ;;  %v904_v5 = vmul.f32 %v2162_v29, %v2895_v57 }
 0x171   :  { %2073 = vmatprep.mubr.msk.bf16.mxu1 %vm87_vm0, %v1083_v63  ;;  %v538_v45 = vpop.xlane.xlu1 %537  ;;  %v631_v39 = vpop.xlane.xlu0 %630  ;;  %v873_v59 = vmul.f32 %v2164_v46, %v2904_v48  ;;  %v1043_v48 = vadd.f32 %v3107_v56, %v973_v21 }
 0x172   :  { %2177 = vrsqrt.f32 %v780_v47  ;;  %v686_v32 = vmul.f32 0.03125, %v538_v45  ;;  %v717_v13 = vmul.f32 0.03125, %v631_v39  ;;  %v1068_v23 = vpack.c.bf16 %v1012_v8, %v1011_v50 }
 0x173   :  { %v2166_v62 = vpop.eup %2165  ;;  %2179 = vrsqrt.f32 %v749_v41  ;;  %v974_v15 = vmul.f32 %v3100_v34, %v904_v5  ;;  %v943_v51 = vmul.f32 %v3100_v34, %v873_v59 }
 0x174   :  { %v2168_v22 = vpop.eup %2167  ;;  %v750_v57 = vadd.f32 1e-05, %v686_v32  ;;  %v781_v33 = vadd.f32 1e-05, %v717_v13  ;;  %2042 = vmatmul.mubr.msk.bf16.gmra.mxu0 %vm87_vm0, %v1068_v23  ;;  %v874_v26 = vmul.f32 %v2166_v62, %v2907_v61 }
 0x175   :  { %v634_v1 = vpop.xlane.xlu1 %633  ;;  %v541_v3 = vpop.xlane.xlu0 %540  ;;  %v1044_v58 = vadd.f32 %v3107_v56, %v974_v15  ;;  %v905_v12 = vmul.f32 %v2168_v22, %v2916_v40  ;;  %v1013_v18 = vadd.f32 %v3107_v56, %v943_v51 }
 0x176   :  { %2181 = vrsqrt.f32 %v750_v57  ;;  %v718_v6 = vmul.f32 0.03125, %v634_v1  ;;  %v687_v54 = vmul.f32 0.03125, %v541_v3  ;;  %v944_v10 = vmul.f32 %v3100_v34, %v874_v26 }
 0x177   :  { %v2170_v14 = vpop.eup %2169  ;;  %2183 = vrsqrt.f32 %v781_v33  ;;  %v1084_v25 = vpack.c.bf16 %v1044_v58, %v1043_v48  ;;  %v975_v2 = vmul.f32 %v3100_v34, %v905_v12 }
 0x178   :  { %v2172_v30 = vpop.eup %2171  ;;  %v782_v61 = vadd.f32 1e-05, %v718_v6  ;;  %v751_v9 = vadd.f32 1e-05, %v687_v54  ;;  %v1014_v17 = vadd.f32 %v3107_v56, %v944_v10  ;;  %v906_v31 = vmul.f32 %v2170_v14, %v2919_v4 }
 0x179   :  { %2074 = vmatmul.mubr.msk.bf16.gmra.mxu1 %vm87_vm0, %v1084_v25  ;;  %v544_v40 = vpop.xlane.xlu1 %543  ;;  %v637_v37 = vpop.xlane.xlu0 %636  ;;  %v875_v36 = vmul.f32 %v2172_v30, %v2928_v24  ;;  %v1045_v24 = vadd.f32 %v3107_v56, %v975_v2 }
 0x17a   :  { %2185 = vrsqrt.f32 %v782_v61  ;;  %v688_v43 = vmul.f32 0.03125, %v544_v40  ;;  %v719_v44 = vmul.f32 0.03125, %v637_v37  ;;  %v1069_v16 = vpack.c.bf16 %v1014_v17, %v1013_v18 }
 0x17b   :  { %v2174_v7 = vpop.eup %2173  ;;  %2187 = vrsqrt.f32 %v751_v9  ;;  %v976_v53 = vmul.f32 %v3100_v34, %v906_v31  ;;  %v945_v55 = vmul.f32 %v3100_v34, %v875_v36 }
 0x17c   :  { %v2176_v0 = vpop.eup %2175  ;;  %v752_v4 = vadd.f32 1e-05, %v688_v43  ;;  %v783_v60 = vadd.f32 1e-05, %v719_v44  ;;  %2045 = vmatprep.mubr.msk.bf16.mxu0 %vm87_vm0, %v1069_v16  ;;  %v876_v42 = vmul.f32 %v2174_v7, %v2931_v11 }
 0x17d   :  { %v640_v52 = vpop.xlane.xlu1 %639  ;;  %v547_v29 = vpop.xlane.xlu0 %546  ;;  %v1046_v63 = vadd.f32 %v3107_v56, %v976_v53  ;;  %v907_v50 = vmul.f32 %v2176_v0, %v2940_v38  ;;  %v1015_v45 = vadd.f32 %v3107_v56, %v945_v55 }
 0x17e   :  { %2189 = vrsqrt.f32 %v752_v4  ;;  %v720_v46 = vmul.f32 0.03125, %v640_v52  ;;  %v689_v47 = vmul.f32 0.03125, %v547_v29  ;;  %v946_v41 = vmul.f32 %v3100_v34, %v876_v42 }
 0x17f   :  { %v2178_v8 = vpop.eup %2177  ;;  %2191 = vrsqrt.f32 %v783_v60  ;;  %v1085_v5 = vpack.c.bf16 %v1046_v63, %v1045_v24  ;;  %v977_v23 = vmul.f32 %v3100_v34, %v907_v50  ;;  %v3741_v60 = vld [vmem:[#allocation17_spill] sm:$0xff]  ;;  %v3742_v63 = vld [vmem:[#allocation18_spill] sm:$0xff] }
 0x180   :  { %v2180_v39 = vpop.eup %2179  ;;  %v784_v11 = vadd.f32 1e-05, %v720_v46  ;;  %v753_v21 = vadd.f32 1e-05, %v689_v47  ;;  %v1016_v59 = vadd.f32 %v3107_v56, %v946_v41  ;;  %v908_v32 = vmul.f32 %v2178_v8, %v2943_v19 }
 0x181   :  { %2077 = vmatprep.mubr.msk.bf16.mxu1 %vm87_vm0, %v1085_v5  ;;  %v550_v38 = vpop.xlane.xlu1 %549  ;;  %v643_v13 = vpop.xlane.xlu0 %642  ;;  %v877_v62 = vmul.f32 %v2180_v39, %v2952_v20  ;;  %v1047_v20 = vadd.f32 %v3107_v56, %v977_v23 }
 0x182   :  { %2193 = vrsqrt.f32 %v784_v11  ;;  %v690_v15 = vmul.f32 0.03125, %v550_v38  ;;  %v721_v51 = vmul.f32 0.03125, %v643_v13  ;;  %v1070_v22 = vpack.c.bf16 %v1016_v59, %v1015_v45 }
 0x183   :  { %v2182_v57 = vpop.eup %2181  ;;  %2195 = vrsqrt.f32 %v753_v21  ;;  %v978_v33 = vmul.f32 %v3100_v34, %v908_v32  ;;  %v947_v26 = vmul.f32 %v3100_v34, %v877_v62  ;;  %v3743_v32 = vld [vmem:[#allocation19_spill] sm:$0xff] }
 0x184   :  { %v2184_v1 = vpop.eup %2183  ;;  %v754_v19 = vadd.f32 1e-05, %v690_v15  ;;  %v785_v3 = vadd.f32 1e-05, %v721_v51  ;;  %2046 = vmatmul.mubr.msk.bf16.gmra.mxu0 %vm87_vm0, %v1070_v22  ;;  %v878_v48 = vmul.f32 %v2182_v57, %v2955_v27  ;;  %v3744_v15 = vld [vmem:[#allocation20_spill] sm:$0xff] }
 0x185   :  { %v646_v58 = vpop.xlane.xlu1 %645  ;;  %v553_v12 = vpop.xlane.xlu0 %552  ;;  %v1048_v6 = vadd.f32 %v3107_v56, %v978_v33  ;;  %v909_v54 = vmul.f32 %v2184_v1, %v2964_v49  ;;  %v1017_v61 = vadd.f32 %v3107_v56, %v947_v26 }
 0x186   :  { %2197 = vrsqrt.f32 %v754_v19  ;;  %v722_v10 = vmul.f32 0.03125, %v646_v58  ;;  %v691_v14 = vmul.f32 0.03125, %v553_v12  ;;  %v948_v25 = vmul.f32 %v3100_v34, %v878_v48  ;;  %v3745_v12 = vld [vmem:[#allocation21_spill] sm:$0xff] }
 0x187   :  { %v2186_v18 = vpop.eup %2185  ;;  %2199 = vrsqrt.f32 %v785_v3  ;;  %v1086_v30 = vpack.c.bf16 %v1048_v6, %v1047_v20  ;;  %v979_v2 = vmul.f32 %v3100_v34, %v909_v54 }
 0x188   :  { %v2188_v9 = vpop.eup %2187  ;;  %v786_v27 = vadd.f32 1e-05, %v722_v10  ;;  %v755_v17 = vadd.f32 1e-05, %v691_v14  ;;  %v1018_v31 = vadd.f32 %v3107_v56, %v948_v25  ;;  %v910_v40 = vmul.f32 %v2186_v18, %v2967_v35  ;;  %v3746_v25 = vld [vmem:[#allocation2_spill] sm:$0xff] }
 0x189   :  { %2078 = vmatmul.mubr.msk.bf16.gmra.mxu1 %vm87_vm0, %v1086_v30  ;;  %v556_v49 = vpop.xlane.xlu1 %555  ;;  %v649_v37 = vpop.xlane.xlu0 %648  ;;  %v879_v36 = vmul.f32 %v2188_v9, %v2976_v28  ;;  %v1049_v28 = vadd.f32 %v3107_v56, %v979_v2 }
 0x18a   :  { %2201 = vrsqrt.f32 %v786_v27  ;;  %v692_v43 = vmul.f32 0.03125, %v556_v49  ;;  %v723_v44 = vmul.f32 0.03125, %v649_v37  ;;  %v1071_v16 = vpack.c.bf16 %v1018_v31, %v1017_v61 }
 0x18b   :  { %v2190_v7 = vpop.eup %2189  ;;  %2203 = vrsqrt.f32 %v755_v17  ;;  %v980_v53 = vmul.f32 %v3100_v34, %v910_v40  ;;  %v949_v55 = vmul.f32 %v3100_v34, %v879_v36  ;;  %v3747_v36 = vld [vmem:[#allocation3_spill] sm:$0xff] }
 0x18c   :  { %v2192_v0 = vpop.eup %2191  ;;  %v756_v35 = vadd.f32 1e-05, %v692_v43  ;;  %v787_v4 = vadd.f32 1e-05, %v723_v44  ;;  %2049 = vmatprep.mubr.msk.bf16.mxu0 %vm87_vm0, %v1071_v16  ;;  %v880_v42 = vmul.f32 %v2190_v7, %v3741_v60 }
 0x18d   :  { %v652_v52 = vpop.xlane.xlu1 %651  ;;  %v559_v29 = vpop.xlane.xlu0 %558  ;;  %v1050_v24 = vadd.f32 %v3107_v56, %v980_v53  ;;  %v911_v50 = vmul.f32 %v2192_v0, %v3742_v63  ;;  %v1019_v45 = vadd.f32 %v3107_v56, %v949_v55  ;;  %v3748_v53 = vld [vmem:[#allocation4_spill] sm:$0xff]  ;;  %v3749_v63 = vld [vmem:[#allocation5_spill] sm:$0xff] }
 0x18e   :  { %2205 = vrsqrt.f32 %v756_v35  ;;  %v724_v46 = vmul.f32 0.03125, %v652_v52  ;;  %v693_v47 = vmul.f32 0.03125, %v559_v29  ;;  %v950_v41 = vmul.f32 %v3100_v34, %v880_v42 }
 0x18f   :  { %v2194_v8 = vpop.eup %2193  ;;  %2207 = vrsqrt.f32 %v787_v4  ;;  %v1087_v5 = vpack.c.bf16 %v1050_v24, %v1049_v28  ;;  %v981_v62 = vmul.f32 %v3100_v34, %v911_v50 }
 0x190   :  { %v2196_v39 = vpop.eup %2195  ;;  %v788_v11 = vadd.f32 1e-05, %v724_v46  ;;  %v757_v21 = vadd.f32 1e-05, %v693_v47  ;;  %v1020_v59 = vadd.f32 %v3107_v56, %v950_v41  ;;  %v912_v38 = vmul.f32 %v2194_v8, %v3743_v32  ;;  %v3750_v8 = vld [vmem:[#allocation6_spill] sm:$0xff] }
 0x191   :  { %2081 = vmatprep.mubr.msk.bf16.mxu1 %vm87_vm0, %v1087_v5  ;;  %v562_v13 = vpop.xlane.xlu1 %561  ;;  %v655_v23 = vpop.xlane.xlu0 %654  ;;  %v881_v51 = vmul.f32 %v2196_v39, %v3744_v15  ;;  %v1051_v10 = vadd.f32 %v3107_v56, %v981_v62 }
 0x192   :  { %2209 = vrsqrt.f32 %v788_v11  ;;  %v694_v22 = vmul.f32 0.03125, %v562_v13  ;;  %v725_v57 = vmul.f32 0.03125, %v655_v23  ;;  %v1072_v33 = vpack.c.bf16 %v1020_v59, %v1019_v45  ;;  %v3751_v23 = vld [vmem:[#allocation7_spill] sm:$0xff] }
 0x193   :  { %v2198_v26 = vpop.eup %2197  ;;  %2211 = vrsqrt.f32 %v757_v21  ;;  %v982_v1 = vmul.f32 %v3100_v34, %v912_v38  ;;  %v951_v19 = vmul.f32 %v3100_v34, %v881_v51  ;;  %v3752_v51 = vld [vmem:[#allocation8_spill] sm:$0xff] }
 0x194   :  { %v2200_v3 = vpop.eup %2199  ;;  %v758_v48 = vadd.f32 1e-05, %v694_v22  ;;  %v789_v58 = vadd.f32 1e-05, %v725_v57  ;;  %2050 = vmatmul.mubr.msk.bf16.gmra.mxu0 %vm87_vm0, %v1072_v33  ;;  %v882_v20 = vmul.f32 %v2198_v26, %v3745_v12 }
 0x195   :  { %v658_v6 = vpop.xlane.xlu1 %657  ;;  %v565_v54 = vpop.xlane.xlu0 %564  ;;  %v1052_v14 = vadd.f32 %v3107_v56, %v982_v1  ;;  %v913_v18 = vmul.f32 %v2200_v3, %v3746_v25  ;;  %v1021_v31 = vadd.f32 %v3107_v56, %v951_v19 }
 0x196   :  { %2213 = vrsqrt.f32 %v758_v48  ;;  %v726_v30 = vmul.f32 0.03125, %v658_v6  ;;  %v695_v61 = vmul.f32 0.03125, %v565_v54  ;;  %v952_v9 = vmul.f32 %v3100_v34, %v882_v20  ;;  %v3753_v48 = vld [vmem:[#allocation9_spill] sm:$0xff]  ;;  %v3754_v20 = vld [vmem:[#allocation10_spill] sm:$0xff] }
 0x197   :  { %v2202_v27 = vpop.eup %2201  ;;  %2215 = vrsqrt.f32 %v789_v58  ;;  %v1088_v17 = vpack.c.bf16 %v1052_v14, %v1051_v10  ;;  %v983_v7 = vmul.f32 %v3100_v34, %v913_v18 }
 0x198   :  { %v2204_v40 = vpop.eup %2203  ;;  %v790_v49 = vadd.f32 1e-05, %v726_v30  ;;  %v759_v37 = vadd.f32 1e-05, %v695_v61  ;;  %v1022_v2 = vadd.f32 %v3107_v56, %v952_v9  ;;  %v914_v43 = vmul.f32 %v2202_v27, %v3747_v36  ;;  %v3755_v61 = vld [vmem:[#allocation11_spill] sm:$0xff] }
 0x199   :  { %2082 = vmatmul.mubr.msk.bf16.gmra.mxu1 %vm87_vm0, %v1088_v17  ;;  %v568_v44 = vpop.xlane.xlu1 %567  ;;  %v661_v16 = vpop.xlane.xlu0 %660  ;;  %v883_v55 = vmul.f32 %v2204_v40, %v3748_v53  ;;  %v1053_v47 = vadd.f32 %v3107_v56, %v983_v7  ;;  %v2227_v27 = vld [vmem:[%s3654_s1] ss:$0 sm:$0xff] }
 0x19a   :  { %2217 = vrsqrt.f32 %v790_v49  ;;  %v696_v0 = vmul.f32 0.03125, %v568_v44  ;;  %v727_v35 = vmul.f32 0.03125, %v661_v16  ;;  %v1073_v4 = vpack.c.bf16 %v1022_v2, %v1021_v31  ;;  %v3756_v31 = vld [vmem:[#allocation12_spill] sm:$0xff]  ;;  %v3757_v44 = vld [vmem:[#allocation13_spill] sm:$0xff]  ;;  %v3758_v53 = vld [vmem:[#allocation14_spill] sm:$0xff] }
 0x19b   :  { %v2206_v60 = vpop.eup %2205  ;;  %2219 = vrsqrt.f32 %v759_v37  ;;  %v984_v42 = vmul.f32 %v3100_v34, %v914_v43  ;;  %v953_v52 = vmul.f32 %v3100_v34, %v883_v55 }
 0x19c   :  { %v2208_v29 = vpop.eup %2207  ;;  %v760_v28 = vadd.f32 1e-05, %v696_v0  ;;  %v791_v24 = vadd.f32 1e-05, %v727_v35  ;;  %2053 = vmatprep.mubr.msk.bf16.mxu0 %vm87_vm0, %v1073_v4  ;;  %v884_v50 = vmul.f32 %v2206_v60, %v3749_v63  ;;  %v2228_v60 = vld [vmem:[%s3655_s2] ss:$0 sm:$0xff] }
 0x19d   :  { %v664_v46 = vpop.xlane.xlu1 %663  ;;  %v1054_v41 = vadd.f32 %v3107_v56, %v984_v42  ;;  %v915_v5 = vmul.f32 %v2208_v29, %v3750_v8  ;;  %v1023_v59 = vadd.f32 %v3107_v56, %v953_v52  ;;  %v3759_v29 = vld [vmem:[#allocation22_spill] sm:$0xff] }
 0x19e   :  { %2221 = vrsqrt.f32 %v760_v28  ;;  %v728_v45 = vmul.f32 0.03125, %v664_v46  ;;  %v954_v39 = vmul.f32 %v3100_v34, %v884_v50 }
 0x19f   :  { %v2210_v11 = vpop.eup %2209  ;;  %2223 = vrsqrt.f32 %v791_v24  ;;  %v1089_v21 = vpack.c.bf16 %v1054_v41, %v1053_v47  ;;  %v985_v15 = vmul.f32 %v3100_v34, %v915_v5  ;;  %v3330_v41 = vld [vmem:[%s3656_s4] ss:$0 sm:$0xff] }
 0x1a0   :  { %v2212_v32 = vpop.eup %2211  ;;  %v792_v38 = vadd.f32 1e-05, %v728_v45  ;;  %v1024_v13 = vadd.f32 %v3107_v56, %v954_v39  ;;  %v916_v62 = vmul.f32 %v2210_v11, %v3751_v23 }
 0x1a1   :  { %2085 = vmatprep.mubr.msk.bf16.mxu1 %vm87_vm0, %v1089_v21  ;;  %v885_v22 = vmul.f32 %v2212_v32, %v3752_v51  ;;  %v1055_v19 = vadd.f32 %v3107_v56, %v985_v15 }
 0x1a2   :  { %2225 = vrsqrt.f32 %v792_v38  ;;  %v1074_v57 = vpack.c.bf16 %v1024_v13, %v1023_v59  ;;  %v986_v33 = vmul.f32 %v3100_v34, %v916_v62 }
 0x1a3   :  { %v2214_v26 = vpop.eup %2213  ;;  %v955_v12 = vmul.f32 %v3100_v34, %v885_v22 }
 0x1a4   :  { %v2216_v1 = vpop.eup %2215  ;;  %2054 = vmatmul.mubr.msk.bf16.gmra.mxu0 %vm87_vm0, %v1074_v57  ;;  %v1056_v3 = vadd.f32 %v3107_v56, %v986_v33  ;;  %v886_v58 = vmul.f32 %v2214_v26, %v3753_v48 }
 0x1a5   :  { %v917_v6 = vmul.f32 %v2216_v1, %v3754_v20  ;;  %v1025_v18 = vadd.f32 %v3107_v56, %v955_v12 }
 0x1a6   :  { %v1090_v54 = vpack.c.bf16 %v1056_v3, %v1055_v19  ;;  %v956_v10 = vmul.f32 %v3100_v34, %v886_v58 }
 0x1a7   :  { %v2218_v14 = vpop.eup %2217  ;;  %v987_v17 = vmul.f32 %v2227_v27, %v917_v6 }
 0x1a8   :  { %v2220_v25 = vpop.eup %2219  ;;  %2086 = vmatmul.mubr.msk.bf16.gmra.mxu1 %vm87_vm0, %v1090_v54  ;;  %v1026_v30 = vadd.f32 %v3107_v56, %v956_v10  ;;  %v918_v9 = vmul.f32 %v2218_v14, %v3755_v61 }
 0x1a9   :  { %v887_v40 = vmul.f32 %v2220_v25, %v3756_v31  ;;  %v1057_v36 = vadd.f32 %v3107_v56, %v987_v17 }
 0x1aa   :  { %v1075_v49 = vpack.c.bf16 %v1026_v30, %v1025_v18  ;;  %v988_v37 = vmul.f32 %v2227_v27, %v918_v9 }
 0x1ab   :  { %v2222_v34 = vpop.eup %2221  ;;  %v957_v7 = vmul.f32 %v2227_v27, %v887_v40 }
 0x1ac   :  { %v2224_v2 = vpop.eup %2223  ;;  %2057 = vmatprep.mubr.msk.bf16.mxu0 %vm87_vm0, %v1075_v49  ;;  %v1058_v43 = vadd.f32 %v3107_v56, %v988_v37  ;;  %v888_v16 = vmul.f32 %v2222_v34, %v3757_v44 }
 0x1ad   :  { %v919_v55 = vmul.f32 %v2224_v2, %v3758_v53  ;;  %v1027_v42 = vadd.f32 %v2228_v60, %v957_v7 }
 0x1ae   :  { %v1091_v0 = vpack.c.bf16 %v1058_v43, %v1057_v36  ;;  %v958_v35 = vmul.f32 %v2227_v27, %v888_v16 }
 0x1af   :  { %v2226_v4 = vpop.eup %2225  ;;  %v989_v24 = vmul.f32 %v2227_v27, %v919_v55 }
 0x1b0   :  { %2089 = vmatprep.mubr.msk.bf16.mxu1 %vm87_vm0, %v1091_v0  ;;  %v1028_v52 = vadd.f32 %v2228_v60, %v958_v35  ;;  %v920_v28 = vmul.f32 %v2226_v4, %v3759_v29 }
 0x1b1   :  { %v1059_v50 = vadd.f32 %v2228_v60, %v989_v24 }
 0x1b2   :  { %v1076_v56 = vpack.c.bf16 %v1028_v52, %v1027_v42  ;;  %v990_v63 = vmul.f32 %v2227_v27, %v920_v28 }
 0x1b4   :  { %2058 = vmatmul.mubr.msk.bf16.gmra.mxu0 %vm87_vm0, %v1076_v56  ;;  %v1060_v46 = vadd.f32 %v2228_v60, %v990_v63 }
 0x1b6   :  { %v1092_v47 = vpack.c.bf16 %v1060_v46, %v1059_v50 }
 0x1b8   :  { %2090 = vmatmul.mubr.msk.bf16.gmra.mxu1 %vm87_vm0, %v1092_v47 }
 0x204   :  { %v2031_v8 = vpop.f32.mrf.mxu0 }
 0x205   :  { %v1255_v5 = vadd.f32 %v2031_v8, %v3330_v41 }
 0x206   :  { %v1246_v45 = vpop.f32.mrf.mxu0 }
 0x207   :  { %v1929_v39 = vpack.c.bf16 %v1255_v5, %v1255_v5  ;;  %v1247_v11 = vadd.f32 %v3330_v41, %v1246_v45 }
 0x208   :  { %v2032_v21 = vpop.f32.mrf.mxu0 }
 0x209   :  { %1760 = vst.msk [vmem:[%s3657_s5 + $0x8] sm:$0xf] %vm1757_vm1, %v1929_v39  ;;  %v1927_v59 = vpack.c.bf16 %v1247_v11, %v1247_v11  ;;  %v1258_v32 = vadd.f32 %v2032_v21, %v3330_v41  ;;  %v2063_v38 = vpop.f32.mrf.mxu1 }
 0x20a   :  { %v1383_v13 = vadd.f32 %v2063_v38, %v3330_v41  ;;  %v1249_v23 = vpop.f32.mrf.mxu0 }
 0x20b   :  { %1758 = vst.msk [vmem:[%s3657_s5] sm:$0xf] %vm1757_vm1, %v1927_v59  ;;  %v1930_v62 = vpack.c.bf16 %v1258_v32, %v1258_v32  ;;  %v1250_v15 = vadd.f32 %v3330_v41, %v1249_v23  ;;  %v1374_v51 = vpop.f32.mrf.mxu1 }
 0x20c   :  { %v1961_v22 = vpack.c.bf16 %v1383_v13, %v1383_v13  ;;  %v1375_v57 = vadd.f32 %v3330_v41, %v1374_v51 }
 0x20d   :  { %1761 = vst.msk [vmem:[%s3657_s5 + $0xc] sm:$0xf] %vm1757_vm1, %v1930_v62  ;;  %v1928_v33 = vpack.c.bf16 %v1250_v15, %v1250_v15  ;;  %v2064_v26 = vpop.f32.mrf.mxu1 }
 0x20e   :  { %1792 = vst.msk [vmem:[%s3657_s5 + $0x88] sm:$0xf] %vm1757_vm1, %v1961_v22  ;;  %v1959_v1 = vpack.c.bf16 %v1375_v57, %v1375_v57  ;;  %v1386_v19 = vadd.f32 %v2064_v26, %v3330_v41 }
 0x20f   :  { %1759 = vst.msk [vmem:[%s3657_s5 + $0x4] sm:$0xf] %vm1757_vm1, %v1928_v33  ;;  %v1377_v3 = vpop.f32.mrf.mxu1 }
 0x210   :  { %1790 = vst.msk [vmem:[%s3657_s5 + $0x80] sm:$0xf] %vm1757_vm1, %v1959_v1  ;;  %v1962_v48 = vpack.c.bf16 %v1386_v19, %v1386_v19  ;;  %v1378_v58 = vadd.f32 %v3330_v41, %v1377_v3 }
 0x212   :  { %1793 = vst.msk [vmem:[%s3657_s5 + $0x8c] sm:$0xf] %vm1757_vm1, %v1962_v48  ;;  %v1960_v12 = vpack.c.bf16 %v1378_v58, %v1378_v58 }
 0x214   :  { %1791 = vst.msk [vmem:[%s3657_s5 + $0x84] sm:$0xf] %vm1757_vm1, %v1960_v12  ;;  %v2035_v20 = vpop.f32.mrf.mxu0 }
 0x215   :  { %v1271_v6 = vadd.f32 %v2035_v20, %v3330_v41 }
 0x216   :  { %v1262_v54 = vpop.f32.mrf.mxu0 }
 0x217   :  { %v1933_v10 = vpack.c.bf16 %v1271_v6, %v1271_v6  ;;  %v1263_v14 = vadd.f32 %v3330_v41, %v1262_v54 }
 0x218   :  { %v2036_v25 = vpop.f32.mrf.mxu0 }
 0x219   :  { %1764 = vst.msk [vmem:[%s3657_s5 + $0x18] sm:$0xf] %vm1757_vm1, %v1933_v10  ;;  %v1931_v18 = vpack.c.bf16 %v1263_v14, %v1263_v14  ;;  %v1274_v30 = vadd.f32 %v2036_v25, %v3330_v41  ;;  %v2067_v61 = vpop.f32.mrf.mxu1 }
 0x21a   :  { %v1399_v9 = vadd.f32 %v2067_v61, %v3330_v41  ;;  %v1265_v27 = vpop.f32.mrf.mxu0 }
 0x21b   :  { %1762 = vst.msk [vmem:[%s3657_s5 + $0x10] sm:$0xf] %vm1757_vm1, %v1931_v18  ;;  %v1934_v17 = vpack.c.bf16 %v1274_v30, %v1274_v30  ;;  %v1266_v31 = vadd.f32 %v3330_v41, %v1265_v27  ;;  %v1390_v40 = vpop.f32.mrf.mxu1 }
 0x21c   :  { %v1965_v49 = vpack.c.bf16 %v1399_v9, %v1399_v9  ;;  %v1391_v37 = vadd.f32 %v3330_v41, %v1390_v40 }
 0x21d   :  { %1765 = vst.msk [vmem:[%s3657_s5 + $0x1c] sm:$0xf] %vm1757_vm1, %v1934_v17  ;;  %v1932_v34 = vpack.c.bf16 %v1266_v31, %v1266_v31  ;;  %v2068_v2 = vpop.f32.mrf.mxu1 }
 0x21e   :  { %1796 = vst.msk [vmem:[%s3657_s5 + $0x98] sm:$0xf] %vm1757_vm1, %v1965_v49  ;;  %v1963_v36 = vpack.c.bf16 %v1391_v37, %v1391_v37  ;;  %v1402_v43 = vadd.f32 %v2068_v2, %v3330_v41 }
 0x21f   :  { %1763 = vst.msk [vmem:[%s3657_s5 + $0x14] sm:$0xf] %vm1757_vm1, %v1932_v34  ;;  %v1393_v44 = vpop.f32.mrf.mxu1 }
 0x220   :  { %1794 = vst.msk [vmem:[%s3657_s5 + $0x90] sm:$0xf] %vm1757_vm1, %v1963_v36  ;;  %v1966_v16 = vpack.c.bf16 %v1402_v43, %v1402_v43  ;;  %v1394_v7 = vadd.f32 %v3330_v41, %v1393_v44 }
 0x222   :  { %1797 = vst.msk [vmem:[%s3657_s5 + $0x9c] sm:$0xf] %vm1757_vm1, %v1966_v16  ;;  %v1964_v53 = vpack.c.bf16 %v1394_v7, %v1394_v7 }
 0x224   :  { %1795 = vst.msk [vmem:[%s3657_s5 + $0x94] sm:$0xf] %vm1757_vm1, %v1964_v53  ;;  %v2039_v55 = vpop.f32.mrf.mxu0 }
 0x225   :  { %v1287_v0 = vadd.f32 %v2039_v55, %v3330_v41 }
 0x226   :  { %v1278_v35 = vpop.f32.mrf.mxu0 }
 0x227   :  { %v1937_v4 = vpack.c.bf16 %v1287_v0, %v1287_v0  ;;  %v1279_v60 = vadd.f32 %v3330_v41, %v1278_v35 }
 0x228   :  { %v2040_v42 = vpop.f32.mrf.mxu0 }
 0x229   :  { %1768 = vst.msk [vmem:[%s3657_s5 + $0x28] sm:$0xf] %vm1757_vm1, %v1937_v4  ;;  %v1935_v52 = vpack.c.bf16 %v1279_v60, %v1279_v60  ;;  %v1290_v29 = vadd.f32 %v2040_v42, %v3330_v41  ;;  %v2071_v28 = vpop.f32.mrf.mxu1 }
 0x22a   :  { %v1415_v24 = vadd.f32 %v2071_v28, %v3330_v41  ;;  %v1281_v56 = vpop.f32.mrf.mxu0 }
 0x22b   :  { %1766 = vst.msk [vmem:[%s3657_s5 + $0x20] sm:$0xf] %vm1757_vm1, %v1935_v52  ;;  %v1938_v63 = vpack.c.bf16 %v1290_v29, %v1290_v29  ;;  %v1282_v50 = vadd.f32 %v3330_v41, %v1281_v56  ;;  %v1406_v46 = vpop.f32.mrf.mxu1 }
 0x22c   :  { %v1969_v47 = vpack.c.bf16 %v1415_v24, %v1415_v24  ;;  %v1407_v8 = vadd.f32 %v3330_v41, %v1406_v46 }
 0x22d   :  { %1769 = vst.msk [vmem:[%s3657_s5 + $0x2c] sm:$0xf] %vm1757_vm1, %v1938_v63  ;;  %v1936_v5 = vpack.c.bf16 %v1282_v50, %v1282_v50  ;;  %v2072_v45 = vpop.f32.mrf.mxu1 }
 0x22e   :  { %1800 = vst.msk [vmem:[%s3657_s5 + $0xa8] sm:$0xf] %vm1757_vm1, %v1969_v47  ;;  %v1967_v39 = vpack.c.bf16 %v1407_v8, %v1407_v8  ;;  %v1418_v11 = vadd.f32 %v2072_v45, %v3330_v41 }
 0x22f   :  { %1767 = vst.msk [vmem:[%s3657_s5 + $0x24] sm:$0xf] %vm1757_vm1, %v1936_v5  ;;  %v1409_v21 = vpop.f32.mrf.mxu1 }
 0x230   :  { %1798 = vst.msk [vmem:[%s3657_s5 + $0xa0] sm:$0xf] %vm1757_vm1, %v1967_v39  ;;  %v1970_v59 = vpack.c.bf16 %v1418_v11, %v1418_v11  ;;  %v1410_v32 = vadd.f32 %v3330_v41, %v1409_v21 }
 0x232   :  { %1801 = vst.msk [vmem:[%s3657_s5 + $0xac] sm:$0xf] %vm1757_vm1, %v1970_v59  ;;  %v1968_v38 = vpack.c.bf16 %v1410_v32, %v1410_v32 }
 0x234   :  { %1799 = vst.msk [vmem:[%s3657_s5 + $0xa4] sm:$0xf] %vm1757_vm1, %v1968_v38  ;;  %v2043_v13 = vpop.f32.mrf.mxu0 }
 0x235   :  { %v1303_v23 = vadd.f32 %v2043_v13, %v3330_v41 }
 0x236   :  { %v1294_v62 = vpop.f32.mrf.mxu0 }
 0x237   :  { %v1941_v15 = vpack.c.bf16 %v1303_v23, %v1303_v23  ;;  %v1295_v51 = vadd.f32 %v3330_v41, %v1294_v62 }
 0x238   :  { %v2044_v22 = vpop.f32.mrf.mxu0 }
 0x239   :  { %1772 = vst.msk [vmem:[%s3657_s5 + $0x38] sm:$0xf] %vm1757_vm1, %v1941_v15  ;;  %v1939_v57 = vpack.c.bf16 %v1295_v51, %v1295_v51  ;;  %v1306_v33 = vadd.f32 %v2044_v22, %v3330_v41  ;;  %v2075_v26 = vpop.f32.mrf.mxu1 }
 0x23a   :  { %v1431_v1 = vadd.f32 %v2075_v26, %v3330_v41  ;;  %v1297_v19 = vpop.f32.mrf.mxu0 }
 0x23b   :  { %1770 = vst.msk [vmem:[%s3657_s5 + $0x30] sm:$0xf] %vm1757_vm1, %v1939_v57  ;;  %v1942_v3 = vpack.c.bf16 %v1306_v33, %v1306_v33  ;;  %v1298_v48 = vadd.f32 %v3330_v41, %v1297_v19  ;;  %v1422_v58 = vpop.f32.mrf.mxu1 }
 0x23c   :  { %v1973_v12 = vpack.c.bf16 %v1431_v1, %v1431_v1  ;;  %v1423_v20 = vadd.f32 %v3330_v41, %v1422_v58 }
 0x23d   :  { %1773 = vst.msk [vmem:[%s3657_s5 + $0x3c] sm:$0xf] %vm1757_vm1, %v1942_v3  ;;  %v1940_v6 = vpack.c.bf16 %v1298_v48, %v1298_v48  ;;  %v2076_v54 = vpop.f32.mrf.mxu1 }
 0x23e   :  { %1804 = vst.msk [vmem:[%s3657_s5 + $0xb8] sm:$0xf] %vm1757_vm1, %v1973_v12  ;;  %v1971_v10 = vpack.c.bf16 %v1423_v20, %v1423_v20  ;;  %v1434_v14 = vadd.f32 %v2076_v54, %v3330_v41 }
 0x23f   :  { %1771 = vst.msk [vmem:[%s3657_s5 + $0x34] sm:$0xf] %vm1757_vm1, %v1940_v6  ;;  %v1425_v25 = vpop.f32.mrf.mxu1 }
 0x240   :  { %1802 = vst.msk [vmem:[%s3657_s5 + $0xb0] sm:$0xf] %vm1757_vm1, %v1971_v10  ;;  %v1974_v18 = vpack.c.bf16 %v1434_v14, %v1434_v14  ;;  %v1426_v30 = vadd.f32 %v3330_v41, %v1425_v25 }
 0x242   :  { %1805 = vst.msk [vmem:[%s3657_s5 + $0xbc] sm:$0xf] %vm1757_vm1, %v1974_v18  ;;  %v1972_v61 = vpack.c.bf16 %v1426_v30, %v1426_v30 }
 0x244   :  { %1803 = vst.msk [vmem:[%s3657_s5 + $0xb4] sm:$0xf] %vm1757_vm1, %v1972_v61  ;;  %v2047_v9 = vpop.f32.mrf.mxu0 }
 0x245   :  { %v1319_v27 = vadd.f32 %v2047_v9, %v3330_v41 }
 0x246   :  { %v1310_v17 = vpop.f32.mrf.mxu0 }
 0x247   :  { %v1945_v31 = vpack.c.bf16 %v1319_v27, %v1319_v27  ;;  %v1311_v40 = vadd.f32 %v3330_v41, %v1310_v17 }
 0x248   :  { %v2048_v49 = vpop.f32.mrf.mxu0 }
 0x249   :  { %1776 = vst.msk [vmem:[%s3657_s5 + $0x48] sm:$0xf] %vm1757_vm1, %v1945_v31  ;;  %v1943_v37 = vpack.c.bf16 %v1311_v40, %v1311_v40  ;;  %v1322_v34 = vadd.f32 %v2048_v49, %v3330_v41  ;;  %v2079_v2 = vpop.f32.mrf.mxu1 }
 0x24a   :  { %v1447_v36 = vadd.f32 %v2079_v2, %v3330_v41  ;;  %v1313_v43 = vpop.f32.mrf.mxu0 }
 0x24b   :  { %1774 = vst.msk [vmem:[%s3657_s5 + $0x40] sm:$0xf] %vm1757_vm1, %v1943_v37  ;;  %v1946_v44 = vpack.c.bf16 %v1322_v34, %v1322_v34  ;;  %v1314_v16 = vadd.f32 %v3330_v41, %v1313_v43  ;;  %v1438_v7 = vpop.f32.mrf.mxu1 }
 0x24c   :  { %v1977_v53 = vpack.c.bf16 %v1447_v36, %v1447_v36  ;;  %v1439_v55 = vadd.f32 %v3330_v41, %v1438_v7 }
 0x24d   :  { %1777 = vst.msk [vmem:[%s3657_s5 + $0x4c] sm:$0xf] %vm1757_vm1, %v1946_v44  ;;  %v1944_v0 = vpack.c.bf16 %v1314_v16, %v1314_v16  ;;  %v2080_v35 = vpop.f32.mrf.mxu1 }
 0x24e   :  { %1808 = vst.msk [vmem:[%s3657_s5 + $0xc8] sm:$0xf] %vm1757_vm1, %v1977_v53  ;;  %v1975_v4 = vpack.c.bf16 %v1439_v55, %v1439_v55  ;;  %v1450_v60 = vadd.f32 %v2080_v35, %v3330_v41 }
 0x24f   :  { %1775 = vst.msk [vmem:[%s3657_s5 + $0x44] sm:$0xf] %vm1757_vm1, %v1944_v0  ;;  %v1441_v42 = vpop.f32.mrf.mxu1 }
 0x250   :  { %1806 = vst.msk [vmem:[%s3657_s5 + $0xc0] sm:$0xf] %vm1757_vm1, %v1975_v4  ;;  %v1978_v52 = vpack.c.bf16 %v1450_v60, %v1450_v60  ;;  %v1442_v29 = vadd.f32 %v3330_v41, %v1441_v42 }
 0x252   :  { %1809 = vst.msk [vmem:[%s3657_s5 + $0xcc] sm:$0xf] %vm1757_vm1, %v1978_v52  ;;  %v1976_v28 = vpack.c.bf16 %v1442_v29, %v1442_v29 }
 0x254   :  { %1807 = vst.msk [vmem:[%s3657_s5 + $0xc4] sm:$0xf] %vm1757_vm1, %v1976_v28  ;;  %v2051_v24 = vpop.f32.mrf.mxu0 }
 0x255   :  { %v1335_v56 = vadd.f32 %v2051_v24, %v3330_v41 }
 0x256   :  { %v1326_v63 = vpop.f32.mrf.mxu0 }
 0x257   :  { %v1949_v50 = vpack.c.bf16 %v1335_v56, %v1335_v56  ;;  %v1327_v46 = vadd.f32 %v3330_v41, %v1326_v63 }
 0x258   :  { %v2052_v47 = vpop.f32.mrf.mxu0 }
 0x259   :  { %1780 = vst.msk [vmem:[%s3657_s5 + $0x58] sm:$0xf] %vm1757_vm1, %v1949_v50  ;;  %v1947_v8 = vpack.c.bf16 %v1327_v46, %v1327_v46  ;;  %v1338_v5 = vadd.f32 %v2052_v47, %v3330_v41  ;;  %v2083_v45 = vpop.f32.mrf.mxu1 }
 0x25a   :  { %v1463_v39 = vadd.f32 %v2083_v45, %v3330_v41  ;;  %v1329_v11 = vpop.f32.mrf.mxu0 }
 0x25b   :  { %1778 = vst.msk [vmem:[%s3657_s5 + $0x50] sm:$0xf] %vm1757_vm1, %v1947_v8  ;;  %v1950_v21 = vpack.c.bf16 %v1338_v5, %v1338_v5  ;;  %v1330_v59 = vadd.f32 %v3330_v41, %v1329_v11  ;;  %v1454_v32 = vpop.f32.mrf.mxu1 }
 0x25c   :  { %v1981_v38 = vpack.c.bf16 %v1463_v39, %v1463_v39  ;;  %v1455_v13 = vadd.f32 %v3330_v41, %v1454_v32 }
 0x25d   :  { %1781 = vst.msk [vmem:[%s3657_s5 + $0x5c] sm:$0xf] %vm1757_vm1, %v1950_v21  ;;  %v1948_v23 = vpack.c.bf16 %v1330_v59, %v1330_v59  ;;  %v2084_v62 = vpop.f32.mrf.mxu1 }
 0x25e   :  { %1812 = vst.msk [vmem:[%s3657_s5 + $0xd8] sm:$0xf] %vm1757_vm1, %v1981_v38  ;;  %v1979_v15 = vpack.c.bf16 %v1455_v13, %v1455_v13  ;;  %v1466_v51 = vadd.f32 %v2084_v62, %v3330_v41 }
 0x25f   :  { %1779 = vst.msk [vmem:[%s3657_s5 + $0x54] sm:$0xf] %vm1757_vm1, %v1948_v23  ;;  %v1457_v22 = vpop.f32.mrf.mxu1 }
 0x260   :  { %1810 = vst.msk [vmem:[%s3657_s5 + $0xd0] sm:$0xf] %vm1757_vm1, %v1979_v15  ;;  %v1982_v57 = vpack.c.bf16 %v1466_v51, %v1466_v51  ;;  %v1458_v33 = vadd.f32 %v3330_v41, %v1457_v22 }
 0x262   :  { %1813 = vst.msk [vmem:[%s3657_s5 + $0xdc] sm:$0xf] %vm1757_vm1, %v1982_v57  ;;  %v1980_v26 = vpack.c.bf16 %v1458_v33, %v1458_v33 }
 0x264   :  { %1811 = vst.msk [vmem:[%s3657_s5 + $0xd4] sm:$0xf] %vm1757_vm1, %v1980_v26  ;;  %v2055_v1 = vpop.f32.mrf.mxu0 }
 0x265   :  { %v1351_v19 = vadd.f32 %v2055_v1, %v3330_v41 }
 0x266   :  { %v1342_v3 = vpop.f32.mrf.mxu0 }
 0x267   :  { %v1953_v48 = vpack.c.bf16 %v1351_v19, %v1351_v19  ;;  %v1343_v58 = vadd.f32 %v3330_v41, %v1342_v3 }
 0x268   :  { %v2056_v12 = vpop.f32.mrf.mxu0  ;;  %v2087_v20 = vpop.f32.mrf.mxu1 }
 0x269   :  { %1784 = vst.msk [vmem:[%s3657_s5 + $0x68] sm:$0xf] %vm1757_vm1, %v1953_v48  ;;  %v1951_v6 = vpack.c.bf16 %v1343_v58, %v1343_v58  ;;  %v1354_v54 = vadd.f32 %v2056_v12, %v3330_v41  ;;  %v1479_v10 = vadd.f32 %v2087_v20, %v3330_v41 }
 0x26a   :  { %v1345_v14 = vpop.f32.mrf.mxu0  ;;  %v1470_v25 = vpop.f32.mrf.mxu1 }
 0x26b   :  { %1782 = vst.msk [vmem:[%s3657_s5 + $0x60] sm:$0xf] %vm1757_vm1, %v1951_v6  ;;  %v1954_v18 = vpack.c.bf16 %v1354_v54, %v1354_v54  ;;  %v1985_v30 = vpack.c.bf16 %v1479_v10, %v1479_v10  ;;  %v1346_v61 = vadd.f32 %v3330_v41, %v1345_v14  ;;  %v1471_v9 = vadd.f32 %v3330_v41, %v1470_v25 }
 0x26c   :  { %v2088_v27 = vpop.f32.mrf.mxu1 }
 0x26d   :  { %1785 = vst.msk [vmem:[%s3657_s5 + $0x6c] sm:$0xf] %vm1757_vm1, %v1954_v18  ;;  %1816 = vst.msk [vmem:[%s3657_s5 + $0xe8] sm:$0xf] %vm1757_vm1, %v1985_v30  ;;  %v1952_v17 = vpack.c.bf16 %v1346_v61, %v1346_v61  ;;  %v1983_v31 = vpack.c.bf16 %v1471_v9, %v1471_v9  ;;  %v1482_v40 = vadd.f32 %v2088_v27, %v3330_v41 }
 0x26e   :  { %v1473_v49 = vpop.f32.mrf.mxu1 }
 0x26f   :  { %1783 = vst.msk [vmem:[%s3657_s5 + $0x64] sm:$0xf] %vm1757_vm1, %v1952_v17  ;;  %1814 = vst.msk [vmem:[%s3657_s5 + $0xe0] sm:$0xf] %vm1757_vm1, %v1983_v31  ;;  %v1986_v37 = vpack.c.bf16 %v1482_v40, %v1482_v40  ;;  %v1474_v34 = vadd.f32 %v3330_v41, %v1473_v49 }
 0x271   :  { %1817 = vst.msk [vmem:[%s3657_s5 + $0xec] sm:$0xf] %vm1757_vm1, %v1986_v37  ;;  %v1984_v2 = vpack.c.bf16 %v1474_v34, %v1474_v34 }
 0x273   :  { %1815 = vst.msk [vmem:[%s3657_s5 + $0xe4] sm:$0xf] %vm1757_vm1, %v1984_v2 }
 0x274   :  { %v2059_v36 = vpop.f32.mrf.mxu0 }
 0x275   :  { %v1367_v43 = vadd.f32 %v2059_v36, %v3330_v41 }
 0x276   :  { %v1358_v44 = vpop.f32.mrf.mxu0 }
 0x277   :  { %v1957_v16 = vpack.c.bf16 %v1367_v43, %v1367_v43  ;;  %v1359_v7 = vadd.f32 %v3330_v41, %v1358_v44 }
 0x278   :  { %v2060_v53 = vpop.f32.mrf.mxu0  ;;  %v2091_v55 = vpop.f32.mrf.mxu1 }
 0x279   :  { %1788 = vst.msk [vmem:[%s3657_s5 + $0x78] sm:$0xf] %vm1757_vm1, %v1957_v16  ;;  %v1955_v0 = vpack.c.bf16 %v1359_v7, %v1359_v7  ;;  %v1370_v35 = vadd.f32 %v2060_v53, %v3330_v41  ;;  %v1495_v4 = vadd.f32 %v2091_v55, %v3330_v41 }
 0x27a   :  { %v1361_v60 = vpop.f32.mrf.mxu0  ;;  %v1486_v42 = vpop.f32.mrf.mxu1 }
 0x27b   :  { %1786 = vst.msk [vmem:[%s3657_s5 + $0x70] sm:$0xf] %vm1757_vm1, %v1955_v0  ;;  %v1958_v52 = vpack.c.bf16 %v1370_v35, %v1370_v35  ;;  %v1989_v29 = vpack.c.bf16 %v1495_v4, %v1495_v4  ;;  %v1362_v28 = vadd.f32 %v3330_v41, %v1361_v60  ;;  %v1487_v24 = vadd.f32 %v3330_v41, %v1486_v42 }
 0x27c   :  { %v2092_v56 = vpop.f32.mrf.mxu1 }
 0x27d   :  { %1789 = vst.msk [vmem:[%s3657_s5 + $0x7c] sm:$0xf] %vm1757_vm1, %v1958_v52  ;;  %1820 = vst.msk [vmem:[%s3657_s5 + $0xf8] sm:$0xf] %vm1757_vm1, %v1989_v29  ;;  %v1956_v63 = vpack.c.bf16 %v1362_v28, %v1362_v28  ;;  %v1987_v50 = vpack.c.bf16 %v1487_v24, %v1487_v24  ;;  %v1498_v46 = vadd.f32 %v2092_v56, %v3330_v41 }
 0x27e   :  { %v1489_v47 = vpop.f32.mrf.mxu1 }
 0x27f   :  { %1787 = vst.msk [vmem:[%s3657_s5 + $0x74] sm:$0xf] %vm1757_vm1, %v1956_v63  ;;  %1818 = vst.msk [vmem:[%s3657_s5 + $0xf0] sm:$0xf] %vm1757_vm1, %v1987_v50  ;;  %v1990_v8 = vpack.c.bf16 %v1498_v46, %v1498_v46  ;;  %v1490_v5 = vadd.f32 %v3330_v41, %v1489_v47 }
 0x281   :  { %1821 = vst.msk [vmem:[%s3657_s5 + $0xfc] sm:$0xf] %vm1757_vm1, %v1990_v8  ;;  %v1988_v45 = vpack.c.bf16 %v1490_v5, %v1490_v5 }
 0x283   :  { %1819 = vst.msk [vmem:[%s3657_s5 + $0xf4] sm:$0xf] %vm1757_vm1, %v1988_v45 }

</bundles_post_ra>
